<compile_context>
chip_gen: v7x
topology: tpu7x:2x2x1
jax: 0.10.0
libtpu: 0.0.40
codegen_flags: <defaults>
</compile_context>

<pallas_src>
import functools

import jax
import jax.numpy as jnp
from jax.experimental import pallas as pl
from jax.experimental.pallas import tpu as pltpu


def _encoder_layer_kernel(x_ref, bias_ref, gamma_ref, beta_ref,
                          wqkv_ref, bqkv_ref, wo_ref, bo_ref,
                          w1_ref, b1_ref, w2_ref, b2_ref,
                          out_ref, *, n_heads, seq_len, eps, compute_dtype):
    f32 = jnp.float32
    x = x_ref[...].astype(f32)            # (R, H) rows = batch_block * seq_len
    mask_bias = bias_ref[...]             # (BB, 1, 1, S)  0 = keep / -1e9 = masked
    gamma = gamma_ref[...].astype(f32)    # (1, H)
    beta = beta_ref[...].astype(f32)      # (1, H)

    R, H = x.shape
    S = seq_len
    BB = R // S
    NH = n_heads
    hd = H // NH
    N = BB * NH

    def layer_norm(v):                    # all-f32 elementwise (v5e-safe)
        mu = jnp.mean(v, axis=-1, keepdims=True)
        var = jnp.mean((v - mu) ** 2, axis=-1, keepdims=True)
        return (v - mu) * jax.lax.rsqrt(var + eps) * gamma + beta

    def mm(a, w):                          # MXU in compute_dtype, f32 accumulation
        return jnp.dot(a.astype(compute_dtype), w.astype(compute_dtype),
                       preferred_element_type=f32)

    # ---- self-attention branch (pre-norm), fused QKV projection ----
    # 1/sqrt(hd) is pre-folded into the Q columns of wqkv/bqkv wrapper-side.
    n1 = layer_norm(x)
    qkv = mm(n1, wqkv_ref[...]) + bqkv_ref[...].astype(f32)            # (R, 3H)

    def to_heads(t):                       # (R, H) -> (BB*NH, S, hd); no per-head loops
        return (t.reshape(BB, S, NH, hd)
                 .transpose(0, 2, 1, 3)
                 .reshape(N, S, hd)
                 .astype(compute_dtype))

    q = to_heads(qkv[:, 0:H])
    k = to_heads(qkv[:, H:2 * H])
    v = to_heads(qkv[:, 2 * H:3 * H])

    s = jnp.einsum('nqd,nkd->nqk', q, k,
                   preferred_element_type=f32)                         # (N, S, S)
    s = s.reshape(BB, NH, S, S) + mask_bias                            # additive mask, broadcast
    s = s - jnp.max(s, axis=-1, keepdims=True)
    p = jnp.exp(s)                                                     # f32 exp (v5e-safe)
    inv = pl.reciprocal(jnp.sum(p, axis=-1, keepdims=True),
                        approx=False)                                  # (BB, NH, S, 1)

    ctx = jnp.einsum('nqk,nkd->nqd',
                     p.reshape(N, S, S).astype(compute_dtype), v,
                     preferred_element_type=f32)                       # (N, S, hd)
    ctx = ctx * inv.reshape(N, S, 1)                                   # deferred normalization
    ctx_flat = (ctx.reshape(BB, NH, S, hd)
                   .transpose(0, 2, 1, 3)
                   .reshape(R, H))                                     # merge heads

    y = x + mm(ctx_flat, wo_ref[...]) + bo_ref[...].astype(f32)

    # ---- position-wise FFN branch (pre-norm, SAME LayerNorm params) ----
    n2 = layer_norm(y)
    h1 = jnp.maximum(mm(n2, w1_ref[...]) + b1_ref[...].astype(f32), 0.0)   # ReLU
    ff = mm(h1, w2_ref[...]) + b2_ref[...].astype(f32)

    out_ref[...] = (y + ff).astype(out_ref.dtype)


def encoder_layer(x, mask, params, *, n_heads, eps=1e-6,
                  compute_dtype=jnp.bfloat16, batch_block=None):
    """x: (B, S, H) f32, mask: (B, 1, S) f32 (1 keep / 0 mask).

    compute_dtype: MXU operand dtype (bf16 default; accumulation/elementwise f32).
    batch_block:   batches per grid step. Default picks B//2 when possible so the
                   parallel grid has >= 2 steps (feeds both v7x TensorCores).
    """
    B, S, H = x.shape
    hd = H // n_heads
    if batch_block is None:
        BB = B // 2 if (B % 2 == 0 and B >= 2) else B
    else:
        BB = batch_block
    assert B % BB == 0, "batch_block must divide batch"
    n_blocks = B // BB
    r_blk = BB * S

    # Fuse Q/K/V projections into one (H, 3H) matmul; fold 1/sqrt(hd) into Q.
    scale = 1.0 / float(hd) ** 0.5
    wqkv = jnp.concatenate([params["wq"] * scale, params["wk"], params["wv"]], axis=1)
    bqkv = jnp.concatenate([params["bq"] * scale, params["bk"], params["bv"]], axis=1)

    cd = compute_dtype
    weights = [params["gamma"], params["beta"],
               wqkv.astype(cd), bqkv,
               params["wo"].astype(cd), params["bo"],
               params["w1"].astype(cd), params["b1"],
               params["w2"].astype(cd), params["b2"]]

    x2 = x.reshape(B * S, H)                 # flatten batch into matmul rows
    # Additive attention bias precomputed wrapper-side: 0 keep / -1e9 masked.
    mask_bias = jnp.where(mask.reshape(B, 1, 1, S) > 0,
                          jnp.float32(0.0), jnp.float32(-1e9))

    kernel = functools.partial(_encoder_layer_kernel, n_heads=n_heads,
                               seq_len=S, eps=eps, compute_dtype=compute_dtype)

    def build(single_buffer_weights):
        def weight_spec(a):
            nd = a.ndim
            idx = lambda i, _nd=nd: (0,) * _nd
            if single_buffer_weights:
                # Constant block index -> single-buffer to halve weight VMEM.
                return pl.BlockSpec(a.shape, idx, pipeline_mode=pl.Buffered(1))
            return pl.BlockSpec(a.shape, idx)

        in_specs = ([pl.BlockSpec((r_blk, H), lambda i: (i, 0)),
                     pl.BlockSpec((BB, 1, 1, S), lambda i: (i, 0, 0, 0))]
                    + [weight_spec(w) for w in weights])

        return pl.pallas_call(
            kernel,
            out_shape=jax.ShapeDtypeStruct((B * S, H), jnp.float32),
            grid_spec=pltpu.PrefetchScalarGridSpec(
                num_scalar_prefetch=0,
                grid=(n_blocks,),
                in_specs=in_specs,
                out_specs=pl.BlockSpec((r_blk, H), lambda i: (i, 0)),
            ),
            compiler_params=pltpu.CompilerParams(
                dimension_semantics=("parallel",)),
        )

    try:
        out = build(True)(x2, mask_bias, *weights)
    except Exception:
        # pipeline_mode / pl.Buffered(1) unsupported on this jax build:
        # fall back to default 2-deep pipelining (correctness unaffected).
        out = build(False)(x2, mask_bias, *weights)
    return out.reshape(B, S, H)


def _reference(x, mask, params, n_heads, eps=1e-6):
    """Pure-JAX f32 reference mirroring the PyTorch forward."""
    def ln(v):
        mu = jnp.mean(v, -1, keepdims=True)
        var = jnp.mean((v - mu) ** 2, -1, keepdims=True)
        return (v - mu) / jnp.sqrt(var + eps) * params["gamma"] + params["beta"]

    B, S, H = x.shape
    hd = H // n_heads
    n1 = ln(x)
    q = n1 @ params["wq"] + params["bq"]
    k = n1 @ params["wk"] + params["bk"]
    v = n1 @ params["wv"] + params["bv"]
    q = q.reshape(B, S, n_heads, hd).transpose(0, 2, 1, 3)
    k = k.reshape(B, S, n_heads, hd).transpose(0, 2, 1, 3)
    v = v.reshape(B, S, n_heads, hd).transpose(0, 2, 1, 3)
    s = jnp.einsum("bhqd,bhkd->bhqk", q, k) / jnp.sqrt(jnp.float32(hd))
    s = jnp.where(mask[:, None, :, :] > 0, s, -1e9)
    p = jax.nn.softmax(s, axis=-1)
    ctx = jnp.einsum("bhqk,bhkd->bhqd", p, v).transpose(0, 2, 1, 3).reshape(B, S, H)
    y = x + ctx @ params["wo"] + params["bo"]
    n2 = ln(y)
    ff = jax.nn.relu(n2 @ params["w1"] + params["b1"]) @ params["w2"] + params["b2"]
    return y + ff


if __name__ == "__main__":
    # params: hidden_dim=32, n_head=4, feed_forward_dim=64; batch=2, seq=8
    B, S, H, NH, DFF = 2, 8, 32, 4, 64

    key = jax.random.PRNGKey(0)
    ks = jax.random.split(key, 14)

    params = {
        "gamma": jnp.ones((1, H), jnp.float32),
        "beta": jnp.zeros((1, H), jnp.float32),
        "wq": jax.random.normal(ks[0], (H, H), jnp.float32) * 0.1,
        "bq": jax.random.normal(ks[1], (1, H), jnp.float32) * 0.05,
        "wk": jax.random.normal(ks[2], (H, H), jnp.float32) * 0.1,
        "bk": jax.random.normal(ks[3], (1, H), jnp.float32) * 0.05,
        "wv": jax.random.normal(ks[4], (H, H), jnp.float32) * 0.1,
        "bv": jax.random.normal(ks[5], (1, H), jnp.float32) * 0.05,
        "wo": jax.random.normal(ks[6], (H, H), jnp.float32) * 0.1,
        "bo": jax.random.normal(ks[7], (1, H), jnp.float32) * 0.05,
        "w1": jax.random.normal(ks[8], (H, DFF), jnp.float32) * 0.1,
        "b1": jax.random.normal(ks[9], (1, DFF), jnp.float32) * 0.05,
        "w2": jax.random.normal(ks[10], (DFF, H), jnp.float32) * 0.1,
        "b2": jax.random.normal(ks[11], (1, H), jnp.float32) * 0.05,
    }

    source = jax.random.normal(ks[12], (B, S, H), jnp.float32)
    # key-padding mask: 1 = attend, 0 = masked (last 2 positions of batch 1 masked)
    source_mask = jnp.ones((B, 1, S), jnp.float32)
    source_mask = source_mask.at[1, 0, -2:].set(0.0)

    ref = _reference(source, source_mask, params, NH)

    # Exact f32 MXU path: tight match to the PyTorch-equivalent reference.
    out_f32 = encoder_layer(source, source_mask, params, n_heads=NH,
                            compute_dtype=jnp.float32)
    out_f32 = jax.block_until_ready(out_f32)
    assert out_f32.shape == (B, S, H)
    err = float(jnp.max(jnp.abs(out_f32 - ref)))
    assert jnp.allclose(out_f32, ref, atol=1e-4, rtol=1e-4), err

    # Default bf16-MXU path (f32 accumulation / f32 elementwise): looser tolerance.
    out_bf16 = encoder_layer(source, source_mask, params, n_heads=NH)
    out_bf16 = jax.block_until_ready(out_bf16)
    err_bf = float(jnp.max(jnp.abs(out_bf16 - ref)))
    assert jnp.allclose(out_bf16, ref, atol=7.5e-2, rtol=7.5e-2), err_bf

    # TODO(synk): dropout inside MultiHeadAttention / FFN is identity (eval mode);
    # no stochastic path is implemented.
    print("KERNEL_OK")
</pallas_src>

<mosaic_0001>
module attributes {stable_mosaic.version = 11 : i64} {
  func.func @_encoder_layer_kernel(%arg0: i32, %arg1: memref<8x32xf32, #tpu.memory_space<vmem>>, %arg2: memref<1x1x1x8xf32, #tpu.memory_space<vmem>>, %arg3: memref<1x32xf32, #tpu.memory_space<vmem>>, %arg4: memref<1x32xf32, #tpu.memory_space<vmem>>, %arg5: memref<32x96xf32, #tpu.memory_space<vmem>>, %arg6: memref<1x96xf32, #tpu.memory_space<vmem>>, %arg7: memref<32x32xf32, #tpu.memory_space<vmem>>, %arg8: memref<1x32xf32, #tpu.memory_space<vmem>>, %arg9: memref<32x64xf32, #tpu.memory_space<vmem>>, %arg10: memref<1x64xf32, #tpu.memory_space<vmem>>, %arg11: memref<64x32xf32, #tpu.memory_space<vmem>>, %arg12: memref<1x32xf32, #tpu.memory_space<vmem>>, %arg13: memref<8x32xf32, #tpu.memory_space<vmem>>) attributes {dimension_semantics = [#tpu.dimension_semantics<parallel>], iteration_bounds = array<i64: 2>, scalar_prefetch = 0 : i64, scratch_operands = 0 : i64, tpu.core_type = #tpu.core_type<tc>, window_params = [{transform_indices = @transform_0, window_bounds = array<i64: 8, 32>}, {transform_indices = @transform_1, window_bounds = array<i64: 1, 1, 1, 8>}, {pipeline_mode = #tpu.pipeline_mode<synchronous>, transform_indices = @transform_2, window_bounds = array<i64: 1, 32>}, {pipeline_mode = #tpu.pipeline_mode<synchronous>, transform_indices = @transform_3, window_bounds = array<i64: 1, 32>}, {pipeline_mode = #tpu.pipeline_mode<synchronous>, transform_indices = @transform_4, window_bounds = array<i64: 32, 96>}, {pipeline_mode = #tpu.pipeline_mode<synchronous>, transform_indices = @transform_5, window_bounds = array<i64: 1, 96>}, {pipeline_mode = #tpu.pipeline_mode<synchronous>, transform_indices = @transform_6, window_bounds = array<i64: 32, 32>}, {pipeline_mode = #tpu.pipeline_mode<synchronous>, transform_indices = @transform_7, window_bounds = array<i64: 1, 32>}, {pipeline_mode = #tpu.pipeline_mode<synchronous>, transform_indices = @transform_8, window_bounds = array<i64: 32, 64>}, {pipeline_mode = #tpu.pipeline_mode<synchronous>, transform_indices = @transform_9, window_bounds = array<i64: 1, 64>}, {pipeline_mode = #tpu.pipeline_mode<synchronous>, transform_indices = @transform_10, window_bounds = array<i64: 64, 32>}, {pipeline_mode = #tpu.pipeline_mode<synchronous>, transform_indices = @transform_11, window_bounds = array<i64: 1, 32>}, {transform_indices = @transform_12, window_bounds = array<i64: 8, 32>}]} {
    %c0 = arith.constant 0 : index
    %c0_0 = arith.constant 0 : index
    %0 = vector.load %arg1[%c0, %c0_0] : memref<8x32xf32, #tpu.memory_space<vmem>>, vector<8x32xf32>
    %c0_1 = arith.constant 0 : index
    %c0_2 = arith.constant 0 : index
    %c0_3 = arith.constant 0 : index
    %c0_4 = arith.constant 0 : index
    %1 = vector.load %arg2[%c0_1, %c0_2, %c0_3, %c0_4] : memref<1x1x1x8xf32, #tpu.memory_space<vmem>>, vector<1x1x1x8xf32>
    %c0_5 = arith.constant 0 : index
    %c0_6 = arith.constant 0 : index
    %2 = vector.load %arg3[%c0_5, %c0_6] : memref<1x32xf32, #tpu.memory_space<vmem>>, vector<1x32xf32>
    %c0_7 = arith.constant 0 : index
    %c0_8 = arith.constant 0 : index
    %3 = vector.load %arg4[%c0_7, %c0_8] : memref<1x32xf32, #tpu.memory_space<vmem>>, vector<1x32xf32>
    %cst = arith.constant dense<0.000000e+00> : vector<8xf32>
    %4 = vector.multi_reduction <add>, %0, %cst [1] : vector<8x32xf32> to vector<8xf32>
    %5 = vector.shape_cast %4 : vector<8xf32> to vector<8x1xf32>
    %cst_9 = arith.constant 3.200000e+01 : f32
    %6 = vector.broadcast %cst_9 : f32 to vector<8x1xf32>
    %7 = arith.divf %5, %6 : vector<8x1xf32>
    %8 = vector.broadcast %7 : vector<8x1xf32> to vector<8x32xf32>
    %9 = arith.subf %0, %8 : vector<8x32xf32>
    %10 = arith.mulf %9, %9 : vector<8x32xf32>
    %cst_10 = arith.constant dense<0.000000e+00> : vector<8xf32>
    %11 = vector.multi_reduction <add>, %10, %cst_10 [1] : vector<8x32xf32> to vector<8xf32>
    %12 = vector.shape_cast %11 : vector<8xf32> to vector<8x1xf32>
    %cst_11 = arith.constant 3.200000e+01 : f32
    %13 = vector.broadcast %cst_11 : f32 to vector<8x1xf32>
    %14 = arith.divf %12, %13 : vector<8x1xf32>
    %15 = vector.broadcast %7 : vector<8x1xf32> to vector<8x32xf32>
    %16 = arith.subf %0, %15 : vector<8x32xf32>
    %cst_12 = arith.constant 9.99999997E-7 : f32
    %17 = vector.broadcast %cst_12 : f32 to vector<8x1xf32>
    %18 = arith.addf %14, %17 : vector<8x1xf32>
    %19 = math.rsqrt %18 : vector<8x1xf32>
    %20 = vector.broadcast %19 : vector<8x1xf32> to vector<8x32xf32>
    %21 = arith.mulf %16, %20 : vector<8x32xf32>
    %22 = vector.broadcast %2 : vector<1x32xf32> to vector<8x32xf32>
    %23 = arith.mulf %21, %22 : vector<8x32xf32>
    %24 = vector.broadcast %3 : vector<1x32xf32> to vector<8x32xf32>
    %25 = arith.addf %23, %24 : vector<8x32xf32>
    %c0_13 = arith.constant 0 : index
    %c0_14 = arith.constant 0 : index
    %26 = vector.load %arg5[%c0_13, %c0_14] : memref<32x96xf32, #tpu.memory_space<vmem>>, vector<32x96xf32>
    %cst_15 = arith.constant dense<0.000000e+00> : vector<8x96xf32>
    %27 = tpu.matmul %25, %26, %cst_15 {dimension_numbers = #tpu.dot_dimension_numbers<[1], [0], [0], [1], [0, 0, 1, 1], [], []>} : vector<8x32xf32>, vector<32x96xf32>, vector<8x96xf32> -> vector<8x96xf32>
    %c0_16 = arith.constant 0 : index
    %c0_17 = arith.constant 0 : index
    %28 = vector.load %arg6[%c0_16, %c0_17] : memref<1x96xf32, #tpu.memory_space<vmem>>, vector<1x96xf32>
    %29 = vector.broadcast %28 : vector<1x96xf32> to vector<8x96xf32>
    %30 = arith.addf %27, %29 : vector<8x96xf32>
    %31 = vector.extract_strided_slice %30 {offsets = [0, 0], sizes = [8, 32], strides = [1, 1]} : vector<8x96xf32> to vector<8x32xf32>
    %32 = vector.shape_cast %31 : vector<8x32xf32> to vector<1x8x4x8xf32>
    %33 = tpu.transpose %32, [0, 2, 1, 3] : vector<1x8x4x8xf32> -> vector<1x4x8x8xf32>
    %34 = vector.shape_cast %33 : vector<1x4x8x8xf32> to vector<4x8x8xf32>
    %35 = vector.extract_strided_slice %30 {offsets = [0, 32], sizes = [8, 32], strides = [1, 1]} : vector<8x96xf32> to vector<8x32xf32>
    %36 = vector.shape_cast %35 : vector<8x32xf32> to vector<1x8x4x8xf32>
    %37 = tpu.transpose %36, [0, 2, 1, 3] : vector<1x8x4x8xf32> -> vector<1x4x8x8xf32>
    %38 = vector.shape_cast %37 : vector<1x4x8x8xf32> to vector<4x8x8xf32>
    %39 = vector.extract_strided_slice %30 {offsets = [0, 64], sizes = [8, 32], strides = [1, 1]} : vector<8x96xf32> to vector<8x32xf32>
    %40 = vector.shape_cast %39 : vector<8x32xf32> to vector<1x8x4x8xf32>
    %41 = tpu.transpose %40, [0, 2, 1, 3] : vector<1x8x4x8xf32> -> vector<1x4x8x8xf32>
    %42 = vector.shape_cast %41 : vector<1x4x8x8xf32> to vector<4x8x8xf32>
    "tpu.trace_start"() <{level = 10 : i32, message = "nqd,nkd->nqk"}> : () -> ()
    %cst_18 = arith.constant dense<0.000000e+00> : vector<4x8x8xf32>
    %43 = tpu.matmul %34, %38, %cst_18 {dimension_numbers = #tpu.dot_dimension_numbers<[2], [2], [1], [1], [0, 0, 0, 1, 1, 1], [0], [0]>} : vector<4x8x8xf32>, vector<4x8x8xf32>, vector<4x8x8xf32> -> vector<4x8x8xf32>
    "tpu.trace_stop"() : () -> ()
    %44 = vector.shape_cast %43 : vector<4x8x8xf32> to vector<1x4x8x8xf32>
    %45 = vector.broadcast %1 : vector<1x1x1x8xf32> to vector<1x4x8x8xf32>
    %46 = arith.addf %44, %45 : vector<1x4x8x8xf32>
    %cst_19 = arith.constant dense<0xFF800000> : vector<1x4x8xf32>
    %47 = vector.multi_reduction <maximumf>, %46, %cst_19 [3] : vector<1x4x8x8xf32> to vector<1x4x8xf32>
    %48 = vector.shape_cast %47 : vector<1x4x8xf32> to vector<1x4x8x1xf32>
    %49 = vector.broadcast %48 : vector<1x4x8x1xf32> to vector<1x4x8x8xf32>
    %50 = arith.subf %46, %49 : vector<1x4x8x8xf32>
    %51 = math.exp %50 : vector<1x4x8x8xf32>
    %cst_20 = arith.constant dense<0.000000e+00> : vector<1x4x8xf32>
    %52 = vector.multi_reduction <add>, %51, %cst_20 [3] : vector<1x4x8x8xf32> to vector<1x4x8xf32>
    %53 = vector.shape_cast %52 : vector<1x4x8xf32> to vector<1x4x8x1xf32>
    %54 = tpu.reciprocal %53 : vector<1x4x8x1xf32> -> vector<1x4x8x1xf32>
    %55 = vector.shape_cast %51 : vector<1x4x8x8xf32> to vector<4x8x8xf32>
    "tpu.trace_start"() <{level = 10 : i32, message = "nqk,nkd->nqd"}> : () -> ()
    %cst_21 = arith.constant dense<0.000000e+00> : vector<4x8x8xf32>
    %56 = tpu.matmul %55, %42, %cst_21 {dimension_numbers = #tpu.dot_dimension_numbers<[2], [1], [1], [2], [0, 0, 0, 1, 1, 2], [0], [0]>} : vector<4x8x8xf32>, vector<4x8x8xf32>, vector<4x8x8xf32> -> vector<4x8x8xf32>
    "tpu.trace_stop"() : () -> ()
    %57 = vector.shape_cast %54 : vector<1x4x8x1xf32> to vector<4x8x1xf32>
    %58 = vector.broadcast %57 : vector<4x8x1xf32> to vector<4x8x8xf32>
    %59 = arith.mulf %56, %58 : vector<4x8x8xf32>
    %60 = vector.shape_cast %59 : vector<4x8x8xf32> to vector<1x4x8x8xf32>
    %61 = tpu.transpose %60, [0, 2, 1, 3] : vector<1x4x8x8xf32> -> vector<1x8x4x8xf32>
    %62 = vector.shape_cast %61 : vector<1x8x4x8xf32> to vector<8x32xf32>
    %c0_22 = arith.constant 0 : index
    %c0_23 = arith.constant 0 : index
    %63 = vector.load %arg7[%c0_22, %c0_23] : memref<32x32xf32, #tpu.memory_space<vmem>>, vector<32x32xf32>
    %cst_24 = arith.constant dense<0.000000e+00> : vector<8x32xf32>
    %64 = tpu.matmul %62, %63, %cst_24 {dimension_numbers = #tpu.dot_dimension_numbers<[1], [0], [0], [1], [0, 0, 1, 1], [], []>} : vector<8x32xf32>, vector<32x32xf32>, vector<8x32xf32> -> vector<8x32xf32>
    %65 = arith.addf %0, %64 : vector<8x32xf32>
    %c0_25 = arith.constant 0 : index
    %c0_26 = arith.constant 0 : index
    %66 = vector.load %arg8[%c0_25, %c0_26] : memref<1x32xf32, #tpu.memory_space<vmem>>, vector<1x32xf32>
    %67 = vector.broadcast %66 : vector<1x32xf32> to vector<8x32xf32>
    %68 = arith.addf %65, %67 : vector<8x32xf32>
    %cst_27 = arith.constant dense<0.000000e+00> : vector<8xf32>
    %69 = vector.multi_reduction <add>, %68, %cst_27 [1] : vector<8x32xf32> to vector<8xf32>
    %70 = vector.shape_cast %69 : vector<8xf32> to vector<8x1xf32>
    %cst_28 = arith.constant 3.200000e+01 : f32
    %71 = vector.broadcast %cst_28 : f32 to vector<8x1xf32>
    %72 = arith.divf %70, %71 : vector<8x1xf32>
    %73 = vector.broadcast %72 : vector<8x1xf32> to vector<8x32xf32>
    %74 = arith.subf %68, %73 : vector<8x32xf32>
    %75 = arith.mulf %74, %74 : vector<8x32xf32>
    %cst_29 = arith.constant dense<0.000000e+00> : vector<8xf32>
    %76 = vector.multi_reduction <add>, %75, %cst_29 [1] : vector<8x32xf32> to vector<8xf32>
    %77 = vector.shape_cast %76 : vector<8xf32> to vector<8x1xf32>
    %cst_30 = arith.constant 3.200000e+01 : f32
    %78 = vector.broadcast %cst_30 : f32 to vector<8x1xf32>
    %79 = arith.divf %77, %78 : vector<8x1xf32>
    %80 = vector.broadcast %72 : vector<8x1xf32> to vector<8x32xf32>
    %81 = arith.subf %68, %80 : vector<8x32xf32>
    %cst_31 = arith.constant 9.99999997E-7 : f32
    %82 = vector.broadcast %cst_31 : f32 to vector<8x1xf32>
    %83 = arith.addf %79, %82 : vector<8x1xf32>
    %84 = math.rsqrt %83 : vector<8x1xf32>
    %85 = vector.broadcast %84 : vector<8x1xf32> to vector<8x32xf32>
    %86 = arith.mulf %81, %85 : vector<8x32xf32>
    %87 = vector.broadcast %2 : vector<1x32xf32> to vector<8x32xf32>
    %88 = arith.mulf %86, %87 : vector<8x32xf32>
    %89 = vector.broadcast %3 : vector<1x32xf32> to vector<8x32xf32>
    %90 = arith.addf %88, %89 : vector<8x32xf32>
    %c0_32 = arith.constant 0 : index
    %c0_33 = arith.constant 0 : index
    %91 = vector.load %arg9[%c0_32, %c0_33] : memref<32x64xf32, #tpu.memory_space<vmem>>, vector<32x64xf32>
    %cst_34 = arith.constant dense<0.000000e+00> : vector<8x64xf32>
    %92 = tpu.matmul %90, %91, %cst_34 {dimension_numbers = #tpu.dot_dimension_numbers<[1], [0], [0], [1], [0, 0, 1, 1], [], []>} : vector<8x32xf32>, vector<32x64xf32>, vector<8x64xf32> -> vector<8x64xf32>
    %c0_35 = arith.constant 0 : index
    %c0_36 = arith.constant 0 : index
    %93 = vector.load %arg10[%c0_35, %c0_36] : memref<1x64xf32, #tpu.memory_space<vmem>>, vector<1x64xf32>
    %94 = vector.broadcast %93 : vector<1x64xf32> to vector<8x64xf32>
    %95 = arith.addf %92, %94 : vector<8x64xf32>
    %cst_37 = arith.constant 0.000000e+00 : f32
    %96 = vector.broadcast %cst_37 : f32 to vector<8x64xf32>
    %97 = arith.maximumf %95, %96 : vector<8x64xf32>
    %c0_38 = arith.constant 0 : index
    %c0_39 = arith.constant 0 : index
    %98 = vector.load %arg11[%c0_38, %c0_39] : memref<64x32xf32, #tpu.memory_space<vmem>>, vector<64x32xf32>
    %cst_40 = arith.constant dense<0.000000e+00> : vector<8x32xf32>
    %99 = tpu.matmul %97, %98, %cst_40 {dimension_numbers = #tpu.dot_dimension_numbers<[1], [0], [0], [1], [0, 0, 1, 1], [], []>} : vector<8x64xf32>, vector<64x32xf32>, vector<8x32xf32> -> vector<8x32xf32>
    %c0_41 = arith.constant 0 : index
    %c0_42 = arith.constant 0 : index
    %100 = vector.load %arg12[%c0_41, %c0_42] : memref<1x32xf32, #tpu.memory_space<vmem>>, vector<1x32xf32>
    %101 = vector.broadcast %100 : vector<1x32xf32> to vector<8x32xf32>
    %102 = arith.addf %99, %101 : vector<8x32xf32>
    %103 = arith.addf %68, %102 : vector<8x32xf32>
    %c0_43 = arith.constant 0 : index
    %c0_44 = arith.constant 0 : index
    %104 = vector.load %arg13[%c0_43, %c0_44] : memref<8x32xf32, #tpu.memory_space<vmem>>, vector<8x32xf32>
    tpu.vector_store %arg13[%c0_43, %c0_44], %103 {strides = array<i32>} : memref<8x32xf32, #tpu.memory_space<vmem>>, vector<8x32xf32>,
    return
  }
  func.func @transform_0(%arg0: i32) -> (i32, i32) {
    %c0_i32 = arith.constant 0 : i32
    %c0_i32_0 = arith.constant 0 : i32
    return %arg0, %c0_i32 : i32, i32
  }
  func.func @transform_1(%arg0: i32) -> (i32, i32, i32, i32) {
    %c0_i32 = arith.constant 0 : i32
    %c0_i32_0 = arith.constant 0 : i32
    %c0_i32_1 = arith.constant 0 : i32
    %c0_i32_2 = arith.constant 0 : i32
    return %arg0, %c0_i32, %c0_i32_0, %c0_i32_1 : i32, i32, i32, i32
  }
  func.func @transform_2(%arg0: i32) -> (i32, i32) {
    %c0_i32 = arith.constant 0 : i32
    %c0_i32_0 = arith.constant 0 : i32
    %c0_i32_1 = arith.constant 0 : i32
    return %c0_i32, %c0_i32_0 : i32, i32
  }
  func.func @transform_3(%arg0: i32) -> (i32, i32) {
    %c0_i32 = arith.constant 0 : i32
    %c0_i32_0 = arith.constant 0 : i32
    %c0_i32_1 = arith.constant 0 : i32
    return %c0_i32, %c0_i32_0 : i32, i32
  }
  func.func @transform_4(%arg0: i32) -> (i32, i32) {
    %c0_i32 = arith.constant 0 : i32
    %c0_i32_0 = arith.constant 0 : i32
    %c0_i32_1 = arith.constant 0 : i32
    return %c0_i32, %c0_i32_0 : i32, i32
  }
  func.func @transform_5(%arg0: i32) -> (i32, i32) {
    %c0_i32 = arith.constant 0 : i32
    %c0_i32_0 = arith.constant 0 : i32
    %c0_i32_1 = arith.constant 0 : i32
    return %c0_i32, %c0_i32_0 : i32, i32
  }
  func.func @transform_6(%arg0: i32) -> (i32, i32) {
    %c0_i32 = arith.constant 0 : i32
    %c0_i32_0 = arith.constant 0 : i32
    %c0_i32_1 = arith.constant 0 : i32
    return %c0_i32, %c0_i32_0 : i32, i32
  }
  func.func @transform_7(%arg0: i32) -> (i32, i32) {
    %c0_i32 = arith.constant 0 : i32
    %c0_i32_0 = arith.constant 0 : i32
    %c0_i32_1 = arith.constant 0 : i32
    return %c0_i32, %c0_i32_0 : i32, i32
  }
  func.func @transform_8(%arg0: i32) -> (i32, i32) {
    %c0_i32 = arith.constant 0 : i32
    %c0_i32_0 = arith.constant 0 : i32
    %c0_i32_1 = arith.constant 0 : i32
    return %c0_i32, %c0_i32_0 : i32, i32
  }
  func.func @transform_9(%arg0: i32) -> (i32, i32) {
    %c0_i32 = arith.constant 0 : i32
    %c0_i32_0 = arith.constant 0 : i32
    %c0_i32_1 = arith.constant 0 : i32
    return %c0_i32, %c0_i32_0 : i32, i32
  }
  func.func @transform_10(%arg0: i32) -> (i32, i32) {
    %c0_i32 = arith.constant 0 : i32
    %c0_i32_0 = arith.constant 0 : i32
    %c0_i32_1 = arith.constant 0 : i32
    return %c0_i32, %c0_i32_0 : i32, i32
  }
  func.func @transform_11(%arg0: i32) -> (i32, i32) {
    %c0_i32 = arith.constant 0 : i32
    %c0_i32_0 = arith.constant 0 : i32
    %c0_i32_1 = arith.constant 0 : i32
    return %c0_i32, %c0_i32_0 : i32, i32
  }
  func.func @transform_12(%arg0: i32) -> (i32, i32) {
    %c0_i32 = arith.constant 0 : i32
    %c0_i32_0 = arith.constant 0 : i32
    return %arg0, %c0_i32 : i32, i32
  }
}

module attributes {stable_mosaic.version = 11 : i64} {
  func.func @_encoder_layer_kernel(%arg0: i32, %arg1: memref<8x32xf32, #tpu.memory_space<vmem>>, %arg2: memref<1x1x1x8xf32, #tpu.memory_space<vmem>>, %arg3: memref<1x32xf32, #tpu.memory_space<vmem>>, %arg4: memref<1x32xf32, #tpu.memory_space<vmem>>, %arg5: memref<32x96xf32, #tpu.memory_space<vmem>>, %arg6: memref<1x96xf32, #tpu.memory_space<vmem>>, %arg7: memref<32x32xf32, #tpu.memory_space<vmem>>, %arg8: memref<1x32xf32, #tpu.memory_space<vmem>>, %arg9: memref<32x64xf32, #tpu.memory_space<vmem>>, %arg10: memref<1x64xf32, #tpu.memory_space<vmem>>, %arg11: memref<64x32xf32, #tpu.memory_space<vmem>>, %arg12: memref<1x32xf32, #tpu.memory_space<vmem>>, %arg13: memref<8x32xf32, #tpu.memory_space<vmem>>) attributes {dimension_semantics = [#tpu.dimension_semantics<parallel>], iteration_bounds = array<i64: 2>, scalar_prefetch = 0 : i64, scratch_operands = 0 : i64, tpu.core_type = #tpu.core_type<tc>, window_params = [{transform_indices = @transform_0, window_bounds = array<i64: 8, 32>}, {transform_indices = @transform_1, window_bounds = array<i64: 1, 1, 1, 8>}, {pipeline_mode = #tpu.pipeline_mode<synchronous>, transform_indices = @transform_2, window_bounds = array<i64: 1, 32>}, {pipeline_mode = #tpu.pipeline_mode<synchronous>, transform_indices = @transform_3, window_bounds = array<i64: 1, 32>}, {pipeline_mode = #tpu.pipeline_mode<synchronous>, transform_indices = @transform_4, window_bounds = array<i64: 32, 96>}, {pipeline_mode = #tpu.pipeline_mode<synchronous>, transform_indices = @transform_5, window_bounds = array<i64: 1, 96>}, {pipeline_mode = #tpu.pipeline_mode<synchronous>, transform_indices = @transform_6, window_bounds = array<i64: 32, 32>}, {pipeline_mode = #tpu.pipeline_mode<synchronous>, transform_indices = @transform_7, window_bounds = array<i64: 1, 32>}, {pipeline_mode = #tpu.pipeline_mode<synchronous>, transform_indices = @transform_8, window_bounds = array<i64: 32, 64>}, {pipeline_mode = #tpu.pipeline_mode<synchronous>, transform_indices = @transform_9, window_bounds = array<i64: 1, 64>}, {pipeline_mode = #tpu.pipeline_mode<synchronous>, transform_indices = @transform_10, window_bounds = array<i64: 64, 32>}, {pipeline_mode = #tpu.pipeline_mode<synchronous>, transform_indices = @transform_11, window_bounds = array<i64: 1, 32>}, {transform_indices = @transform_12, window_bounds = array<i64: 8, 32>}]} {
    %c0 = arith.constant 0 : index
    %c0_0 = arith.constant 0 : index
    %0 = vector.load %arg1[%c0, %c0_0] : memref<8x32xf32, #tpu.memory_space<vmem>>, vector<8x32xf32>
    %c0_1 = arith.constant 0 : index
    %c0_2 = arith.constant 0 : index
    %c0_3 = arith.constant 0 : index
    %c0_4 = arith.constant 0 : index
    %1 = vector.load %arg2[%c0_1, %c0_2, %c0_3, %c0_4] : memref<1x1x1x8xf32, #tpu.memory_space<vmem>>, vector<1x1x1x8xf32>
    %c0_5 = arith.constant 0 : index
    %c0_6 = arith.constant 0 : index
    %2 = vector.load %arg3[%c0_5, %c0_6] : memref<1x32xf32, #tpu.memory_space<vmem>>, vector<1x32xf32>
    %c0_7 = arith.constant 0 : index
    %c0_8 = arith.constant 0 : index
    %3 = vector.load %arg4[%c0_7, %c0_8] : memref<1x32xf32, #tpu.memory_space<vmem>>, vector<1x32xf32>
    %cst = arith.constant dense<0.000000e+00> : vector<8xf32>
    %4 = vector.multi_reduction <add>, %0, %cst [1] : vector<8x32xf32> to vector<8xf32>
    %5 = vector.shape_cast %4 : vector<8xf32> to vector<8x1xf32>
    %cst_9 = arith.constant 3.200000e+01 : f32
    %6 = vector.broadcast %cst_9 : f32 to vector<8x1xf32>
    %7 = arith.divf %5, %6 : vector<8x1xf32>
    %8 = vector.broadcast %7 : vector<8x1xf32> to vector<8x32xf32>
    %9 = arith.subf %0, %8 : vector<8x32xf32>
    %10 = arith.mulf %9, %9 : vector<8x32xf32>
    %cst_10 = arith.constant dense<0.000000e+00> : vector<8xf32>
    %11 = vector.multi_reduction <add>, %10, %cst_10 [1] : vector<8x32xf32> to vector<8xf32>
    %12 = vector.shape_cast %11 : vector<8xf32> to vector<8x1xf32>
    %cst_11 = arith.constant 3.200000e+01 : f32
    %13 = vector.broadcast %cst_11 : f32 to vector<8x1xf32>
    %14 = arith.divf %12, %13 : vector<8x1xf32>
    %15 = vector.broadcast %7 : vector<8x1xf32> to vector<8x32xf32>
    %16 = arith.subf %0, %15 : vector<8x32xf32>
    %cst_12 = arith.constant 9.99999997E-7 : f32
    %17 = vector.broadcast %cst_12 : f32 to vector<8x1xf32>
    %18 = arith.addf %14, %17 : vector<8x1xf32>
    %19 = math.rsqrt %18 : vector<8x1xf32>
    %20 = vector.broadcast %19 : vector<8x1xf32> to vector<8x32xf32>
    %21 = arith.mulf %16, %20 : vector<8x32xf32>
    %22 = vector.broadcast %2 : vector<1x32xf32> to vector<8x32xf32>
    %23 = arith.mulf %21, %22 : vector<8x32xf32>
    %24 = vector.broadcast %3 : vector<1x32xf32> to vector<8x32xf32>
    %25 = arith.addf %23, %24 : vector<8x32xf32>
    %c0_13 = arith.constant 0 : index
    %c0_14 = arith.constant 0 : index
    %26 = vector.load %arg5[%c0_13, %c0_14] : memref<32x96xf32, #tpu.memory_space<vmem>>, vector<32x96xf32>
    %cst_15 = arith.constant dense<0.000000e+00> : vector<8x96xf32>
    %27 = tpu.matmul %25, %26, %cst_15 {dimension_numbers = #tpu.dot_dimension_numbers<[1], [0], [0], [1], [0, 0, 1, 1], [], []>} : vector<8x32xf32>, vector<32x96xf32>, vector<8x96xf32> -> vector<8x96xf32>
    %c0_16 = arith.constant 0 : index
    %c0_17 = arith.constant 0 : index
    %28 = vector.load %arg6[%c0_16, %c0_17] : memref<1x96xf32, #tpu.memory_space<vmem>>, vector<1x96xf32>
    %29 = vector.broadcast %28 : vector<1x96xf32> to vector<8x96xf32>
    %30 = arith.addf %27, %29 : vector<8x96xf32>
    %31 = vector.extract_strided_slice %30 {offsets = [0, 0], sizes = [8, 32], strides = [1, 1]} : vector<8x96xf32> to vector<8x32xf32>
    %32 = vector.shape_cast %31 : vector<8x32xf32> to vector<1x8x4x8xf32>
    %33 = tpu.transpose %32, [0, 2, 1, 3] : vector<1x8x4x8xf32> -> vector<1x4x8x8xf32>
    %34 = vector.shape_cast %33 : vector<1x4x8x8xf32> to vector<4x8x8xf32>
    %35 = vector.extract_strided_slice %30 {offsets = [0, 32], sizes = [8, 32], strides = [1, 1]} : vector<8x96xf32> to vector<8x32xf32>
    %36 = vector.shape_cast %35 : vector<8x32xf32> to vector<1x8x4x8xf32>
    %37 = tpu.transpose %36, [0, 2, 1, 3] : vector<1x8x4x8xf32> -> vector<1x4x8x8xf32>
    %38 = vector.shape_cast %37 : vector<1x4x8x8xf32> to vector<4x8x8xf32>
    %39 = vector.extract_strided_slice %30 {offsets = [0, 64], sizes = [8, 32], strides = [1, 1]} : vector<8x96xf32> to vector<8x32xf32>
    %40 = vector.shape_cast %39 : vector<8x32xf32> to vector<1x8x4x8xf32>
    %41 = tpu.transpose %40, [0, 2, 1, 3] : vector<1x8x4x8xf32> -> vector<1x4x8x8xf32>
    %42 = vector.shape_cast %41 : vector<1x4x8x8xf32> to vector<4x8x8xf32>
    "tpu.trace_start"() <{level = 10 : i32, message = "nqd,nkd->nqk"}> : () -> ()
    %cst_18 = arith.constant dense<0.000000e+00> : vector<4x8x8xf32>
    %43 = tpu.matmul %34, %38, %cst_18 {dimension_numbers = #tpu.dot_dimension_numbers<[2], [2], [1], [1], [0, 0, 0, 1, 1, 1], [0], [0]>} : vector<4x8x8xf32>, vector<4x8x8xf32>, vector<4x8x8xf32> -> vector<4x8x8xf32>
    "tpu.trace_stop"() : () -> ()
    %44 = vector.shape_cast %43 : vector<4x8x8xf32> to vector<1x4x8x8xf32>
    %45 = vector.broadcast %1 : vector<1x1x1x8xf32> to vector<1x4x8x8xf32>
    %46 = arith.addf %44, %45 : vector<1x4x8x8xf32>
    %cst_19 = arith.constant dense<0xFF800000> : vector<1x4x8xf32>
    %47 = vector.multi_reduction <maximumf>, %46, %cst_19 [3] : vector<1x4x8x8xf32> to vector<1x4x8xf32>
    %48 = vector.shape_cast %47 : vector<1x4x8xf32> to vector<1x4x8x1xf32>
    %49 = vector.broadcast %48 : vector<1x4x8x1xf32> to vector<1x4x8x8xf32>
    %50 = arith.subf %46, %49 : vector<1x4x8x8xf32>
    %51 = math.exp %50 : vector<1x4x8x8xf32>
    %cst_20 = arith.constant dense<0.000000e+00> : vector<1x4x8xf32>
    %52 = vector.multi_reduction <add>, %51, %cst_20 [3] : vector<1x4x8x8xf32> to vector<1x4x8xf32>
    %53 = vector.shape_cast %52 : vector<1x4x8xf32> to vector<1x4x8x1xf32>
    %54 = tpu.reciprocal %53 : vector<1x4x8x1xf32> -> vector<1x4x8x1xf32>
    %55 = vector.shape_cast %51 : vector<1x4x8x8xf32> to vector<4x8x8xf32>
    "tpu.trace_start"() <{level = 10 : i32, message = "nqk,nkd->nqd"}> : () -> ()
    %cst_21 = arith.constant dense<0.000000e+00> : vector<4x8x8xf32>
    %56 = tpu.matmul %55, %42, %cst_21 {dimension_numbers = #tpu.dot_dimension_numbers<[2], [1], [1], [2], [0, 0, 0, 1, 1, 2], [0], [0]>} : vector<4x8x8xf32>, vector<4x8x8xf32>, vector<4x8x8xf32> -> vector<4x8x8xf32>
    "tpu.trace_stop"() : () -> ()
    %57 = vector.shape_cast %54 : vector<1x4x8x1xf32> to vector<4x8x1xf32>
    %58 = vector.broadcast %57 : vector<4x8x1xf32> to vector<4x8x8xf32>
    %59 = arith.mulf %56, %58 : vector<4x8x8xf32>
    %60 = vector.shape_cast %59 : vector<4x8x8xf32> to vector<1x4x8x8xf32>
    %61 = tpu.transpose %60, [0, 2, 1, 3] : vector<1x4x8x8xf32> -> vector<1x8x4x8xf32>
    %62 = vector.shape_cast %61 : vector<1x8x4x8xf32> to vector<8x32xf32>
    %c0_22 = arith.constant 0 : index
    %c0_23 = arith.constant 0 : index
    %63 = vector.load %arg7[%c0_22, %c0_23] : memref<32x32xf32, #tpu.memory_space<vmem>>, vector<32x32xf32>
    %cst_24 = arith.constant dense<0.000000e+00> : vector<8x32xf32>
    %64 = tpu.matmul %62, %63, %cst_24 {dimension_numbers = #tpu.dot_dimension_numbers<[1], [0], [0], [1], [0, 0, 1, 1], [], []>} : vector<8x32xf32>, vector<32x32xf32>, vector<8x32xf32> -> vector<8x32xf32>
    %65 = arith.addf %0, %64 : vector<8x32xf32>
    %c0_25 = arith.constant 0 : index
    %c0_26 = arith.constant 0 : index
    %66 = vector.load %arg8[%c0_25, %c0_26] : memref<1x32xf32, #tpu.memory_space<vmem>>, vector<1x32xf32>
    %67 = vector.broadcast %66 : vector<1x32xf32> to vector<8x32xf32>
    %68 = arith.addf %65, %67 : vector<8x32xf32>
    %cst_27 = arith.constant dense<0.000000e+00> : vector<8xf32>
    %69 = vector.multi_reduction <add>, %68, %cst_27 [1] : vector<8x32xf32> to vector<8xf32>
    %70 = vector.shape_cast %69 : vector<8xf32> to vector<8x1xf32>
    %cst_28 = arith.constant 3.200000e+01 : f32
    %71 = vector.broadcast %cst_28 : f32 to vector<8x1xf32>
    %72 = arith.divf %70, %71 : vector<8x1xf32>
    %73 = vector.broadcast %72 : vector<8x1xf32> to vector<8x32xf32>
    %74 = arith.subf %68, %73 : vector<8x32xf32>
    %75 = arith.mulf %74, %74 : vector<8x32xf32>
    %cst_29 = arith.constant dense<0.000000e+00> : vector<8xf32>
    %76 = vector.multi_reduction <add>, %75, %cst_29 [1] : vector<8x32xf32> to vector<8xf32>
    %77 = vector.shape_cast %76 : vector<8xf32> to vector<8x1xf32>
    %cst_30 = arith.constant 3.200000e+01 : f32
    %78 = vector.broadcast %cst_30 : f32 to vector<8x1xf32>
    %79 = arith.divf %77, %78 : vector<8x1xf32>
    %80 = vector.broadcast %72 : vector<8x1xf32> to vector<8x32xf32>
    %81 = arith.subf %68, %80 : vector<8x32xf32>
    %cst_31 = arith.constant 9.99999997E-7 : f32
    %82 = vector.broadcast %cst_31 : f32 to vector<8x1xf32>
    %83 = arith.addf %79, %82 : vector<8x1xf32>
    %84 = math.rsqrt %83 : vector<8x1xf32>
    %85 = vector.broadcast %84 : vector<8x1xf32> to vector<8x32xf32>
    %86 = arith.mulf %81, %85 : vector<8x32xf32>
    %87 = vector.broadcast %2 : vector<1x32xf32> to vector<8x32xf32>
    %88 = arith.mulf %86, %87 : vector<8x32xf32>
    %89 = vector.broadcast %3 : vector<1x32xf32> to vector<8x32xf32>
    %90 = arith.addf %88, %89 : vector<8x32xf32>
    %c0_32 = arith.constant 0 : index
    %c0_33 = arith.constant 0 : index
    %91 = vector.load %arg9[%c0_32, %c0_33] : memref<32x64xf32, #tpu.memory_space<vmem>>, vector<32x64xf32>
    %cst_34 = arith.constant dense<0.000000e+00> : vector<8x64xf32>
    %92 = tpu.matmul %90, %91, %cst_34 {dimension_numbers = #tpu.dot_dimension_numbers<[1], [0], [0], [1], [0, 0, 1, 1], [], []>} : vector<8x32xf32>, vector<32x64xf32>, vector<8x64xf32> -> vector<8x64xf32>
    %c0_35 = arith.constant 0 : index
    %c0_36 = arith.constant 0 : index
    %93 = vector.load %arg10[%c0_35, %c0_36] : memref<1x64xf32, #tpu.memory_space<vmem>>, vector<1x64xf32>
    %94 = vector.broadcast %93 : vector<1x64xf32> to vector<8x64xf32>
    %95 = arith.addf %92, %94 : vector<8x64xf32>
    %cst_37 = arith.constant 0.000000e+00 : f32
    %96 = vector.broadcast %cst_37 : f32 to vector<8x64xf32>
    %97 = arith.maximumf %95, %96 : vector<8x64xf32>
    %c0_38 = arith.constant 0 : index
    %c0_39 = arith.constant 0 : index
    %98 = vector.load %arg11[%c0_38, %c0_39] : memref<64x32xf32, #tpu.memory_space<vmem>>, vector<64x32xf32>
    %cst_40 = arith.constant dense<0.000000e+00> : vector<8x32xf32>
    %99 = tpu.matmul %97, %98, %cst_40 {dimension_numbers = #tpu.dot_dimension_numbers<[1], [0], [0], [1], [0, 0, 1, 1], [], []>} : vector<8x64xf32>, vector<64x32xf32>, vector<8x32xf32> -> vector<8x32xf32>
    %c0_41 = arith.constant 0 : index
    %c0_42 = arith.constant 0 : index
    %100 = vector.load %arg12[%c0_41, %c0_42] : memref<1x32xf32, #tpu.memory_space<vmem>>, vector<1x32xf32>
    %101 = vector.broadcast %100 : vector<1x32xf32> to vector<8x32xf32>
    %102 = arith.addf %99, %101 : vector<8x32xf32>
    %103 = arith.addf %68, %102 : vector<8x32xf32>
    %c0_43 = arith.constant 0 : index
    %c0_44 = arith.constant 0 : index
    %104 = vector.load %arg13[%c0_43, %c0_44] : memref<8x32xf32, #tpu.memory_space<vmem>>, vector<8x32xf32>
    tpu.vector_store %arg13[%c0_43, %c0_44], %103 {strides = array<i32>} : memref<8x32xf32, #tpu.memory_space<vmem>>, vector<8x32xf32>,
    return
  }
  func.func @transform_0(%arg0: i32) -> (i32, i32) {
    %c0_i32 = arith.constant 0 : i32
    %c0_i32_0 = arith.constant 0 : i32
    return %arg0, %c0_i32 : i32, i32
  }
  func.func @transform_1(%arg0: i32) -> (i32, i32, i32, i32) {
    %c0_i32 = arith.constant 0 : i32
    %c0_i32_0 = arith.constant 0 : i32
    %c0_i32_1 = arith.constant 0 : i32
    %c0_i32_2 = arith.constant 0 : i32
    return %arg0, %c0_i32, %c0_i32_0, %c0_i32_1 : i32, i32, i32, i32
  }
  func.func @transform_2(%arg0: i32) -> (i32, i32) {
    %c0_i32 = arith.constant 0 : i32
    %c0_i32_0 = arith.constant 0 : i32
    %c0_i32_1 = arith.constant 0 : i32
    return %c0_i32, %c0_i32_0 : i32, i32
  }
  func.func @transform_3(%arg0: i32) -> (i32, i32) {
    %c0_i32 = arith.constant 0 : i32
    %c0_i32_0 = arith.constant 0 : i32
    %c0_i32_1 = arith.constant 0 : i32
    return %c0_i32, %c0_i32_0 : i32, i32
  }
  func.func @transform_4(%arg0: i32) -> (i32, i32) {
    %c0_i32 = arith.constant 0 : i32
    %c0_i32_0 = arith.constant 0 : i32
    %c0_i32_1 = arith.constant 0 : i32
    return %c0_i32, %c0_i32_0 : i32, i32
  }
  func.func @transform_5(%arg0: i32) -> (i32, i32) {
    %c0_i32 = arith.constant 0 : i32
    %c0_i32_0 = arith.constant 0 : i32
    %c0_i32_1 = arith.constant 0 : i32
    return %c0_i32, %c0_i32_0 : i32, i32
  }
  func.func @transform_6(%arg0: i32) -> (i32, i32) {
    %c0_i32 = arith.constant 0 : i32
    %c0_i32_0 = arith.constant 0 : i32
    %c0_i32_1 = arith.constant 0 : i32
    return %c0_i32, %c0_i32_0 : i32, i32
  }
  func.func @transform_7(%arg0: i32) -> (i32, i32) {
    %c0_i32 = arith.constant 0 : i32
    %c0_i32_0 = arith.constant 0 : i32
    %c0_i32_1 = arith.constant 0 : i32
    return %c0_i32, %c0_i32_0 : i32, i32
  }
  func.func @transform_8(%arg0: i32) -> (i32, i32) {
    %c0_i32 = arith.constant 0 : i32
    %c0_i32_0 = arith.constant 0 : i32
    %c0_i32_1 = arith.constant 0 : i32
    return %c0_i32, %c0_i32_0 : i32, i32
  }
  func.func @transform_9(%arg0: i32) -> (i32, i32) {
    %c0_i32 = arith.constant 0 : i32
    %c0_i32_0 = arith.constant 0 : i32
    %c0_i32_1 = arith.constant 0 : i32
    return %c0_i32, %c0_i32_0 : i32, i32
  }
  func.func @transform_10(%arg0: i32) -> (i32, i32) {
    %c0_i32 = arith.constant 0 : i32
    %c0_i32_0 = arith.constant 0 : i32
    %c0_i32_1 = arith.constant 0 : i32
    return %c0_i32, %c0_i32_0 : i32, i32
  }
  func.func @transform_11(%arg0: i32) -> (i32, i32) {
    %c0_i32 = arith.constant 0 : i32
    %c0_i32_0 = arith.constant 0 : i32
    %c0_i32_1 = arith.constant 0 : i32
    return %c0_i32, %c0_i32_0 : i32, i32
  }
  func.func @transform_12(%arg0: i32) -> (i32, i32) {
    %c0_i32 = arith.constant 0 : i32
    %c0_i32_0 = arith.constant 0 : i32
    return %arg0, %c0_i32 : i32, i32
  }
}

</mosaic_0001>

<bundles_post_ra>
// kernel: tpu_custom_call.1
= control target key start
LH: loop header
LB: loop body
LE: loop exit
PB: predicated region body
PF: predicated region fallthrough
CT: control target
= control target key end

     0   :  { %s3250_s0 = inlined_call_operand.hbm [shape: f32[16,32], index: 0, kind: input, shape index: {}]   ;;  %s3251_s1 = inlined_call_operand.vmem [shape: f32[2,1,1,8], index: 1, kind: input, shape index: {}]   ;;  %s3252_s2 = inlined_call_operand.vmem [shape: f32[1,32], index: 2, kind: input, shape index: {}]   ;;  %s3253_s3 = inlined_call_operand.vmem [shape: f32[1,32], index: 3, kind: input, shape index: {}]   ;;  %s3254_s4 = inlined_call_operand.vmem [shape: f32[32,96], index: 4, kind: input, shape index: {}]   ;;  %s3255_s5 = inlined_call_operand.vmem [shape: f32[1,96], index: 5, kind: input, shape index: {}]   ;;  %s3256_s6 = inlined_call_operand.vmem [shape: f32[32,32], index: 6, kind: input, shape index: {}]   ;;  %s3257_s7 = inlined_call_operand.hbm [shape: f32[1,32], index: 7, kind: input, shape index: {}]   ;;  %s3258_s8 = inlined_call_operand.vmem [shape: f32[32,64], index: 8, kind: input, shape index: {}]   ;;  %s3259_s9 = inlined_call_operand.hbm [shape: f32[1,64], index: 9, kind: input, shape index: {}]   ;;  %s3260_s10 = inlined_call_operand.vmem [shape: f32[64,32], index: 10, kind: input, shape index: {}]   ;;  %s3261_s11 = inlined_call_operand.vmem [shape: f32[1,32], index: 11, kind: input, shape index: {}]   ;;  %s3262_s12 = inlined_call_operand.hbm [shape: f32[16,32], index: 12, kind: output, shape index: {}]  }
   0x1   :  { %3269 = sst [smem:[#allocation14_spill]] %s3257_s7 }
   0x2   :  { %3270 = sst [smem:[#allocation15_spill]] %s3262_s12 }
   0x3   :  { %17 = vsyncpa [#allocation3], 0 }
   0x4   :  { %19 = vsyncpa [#allocation3 + $0x1], 0 }
   0x5   :  { %20 = vsyncpa [#allocation6], 0 }
   0x6   :  { %21 = vsyncpa [#allocation4], 0 }
   0x7   :  { %23 = vsyncpa [#allocation4 + $0x1], 0  ;;  %s2769_s21 = smov 0   ;;  %s2771_s22 = smov 0  }
   0x8   :  { %s2773_s23 = smov 0   ;;  %s2775_s24 = smov 0  }
   0x9 LB: > { %3271 = sst [smem:[#allocation12_spill]] %s2673_s21  ;;  %s2790_s25 = sadd.s32 4294967295, %s2685_s24   ;;  %s2685_s24 = sphi %s2775_s24, %s3294_s24   ;;  %s2681_s23 = sphi %s2773_s23, %s3293_s23   ;;  %s2677_s22 = sphi %s2771_s22, %s3292_s22   ;;  %s2673_s21 = sphi %s2769_s21, %s3291_s21  }
   0xa   : > { %s2220_s26 = sadd.s32 4294967294, %s2685_s24   ;;  %p49_p0 = scmp.ne.s32.totalorder %s2677_s22, %s2673_s21 }
   0xb   : > { %p3265_p1 = scmp.eq.s32.totalorder %s2790_s25, 0  ;;  %p315_p3 = scmp.eq.s32.totalorder %s2220_s26, 1 }
   0xc   : > { %p2221_p5 = scmp.ge.s32.totalorder %s2685_s24, 1  ;;  %p322_p7 = scmp.lt.s32.totalorder %s2685_s24, 3 }
   0xd   : > { %p2799_p4 = por %p3265_p1, %p49_p0  ;;  %p2804_p6 = por %p315_p3, %p49_p0 }
   0xe   : > { %p2809_p8 = pnand %p2221_p5, %p322_p7  ;;  %s2687_s30 = smov [#allocation5]  }
   0xf   : > { %s3272_s27 = scalar_select %p2799_p4, 1, 0 }
  0x10   : > { %s3273_s28 = scalar_select %p2804_p6, 1, 0 }
  0x11   : > { %s3275_s29 = scalar_select %p2809_p8, 1, 0 }
  0x12   : > { %3274 = sst [smem:[#allocation13_spill]] %s3273_s28  ;;  %s350_s13 = sshll.u32 %s2687_s30, 4  ;;  %s351_s13 = int_to_ptr.vmem [resolvable:$true] %s350_s13 }
  0x13   : > { %p2441_p10 = pneg %p2809_p8  ;;  %s2688_s14 = smov [#allocation7]  }
  0x14   : > { %s364_s15 = sshll.u32 %s2688_s14, 4  ;;  %s2825_s17 = sadd.s32 1, %s2685_s24   ;;  %s2822_s15 = int_to_ptr.vmem [resolvable:$true] %s364_s15 }
  0x15   : > { %p2818_p11 = pnand %p2441_p10, %p3265_p1  ;;  %s3277_s7 = sld [smem:[#allocation14_spill]] }
  0x17   : > { %p2531_p13 = pneg %p2818_p11 }
  0x1b   : > { %s2529_s26 = scalar_lea.hbm %s3277_s7, 16 }
  0x1c   : > { %p2530_p12 = scmp.ne.s32.totalorder %s3277_s7, %s2529_s26  ;;  %p2536_p5 = scmp.lt.u32.totalorder %s2529_s26, %s3277_s7 }
  0x1e   : > { %p2532_p0 = pnand %p2531_p13, %p2530_p12 }
  0x20   : > { %p2533_p3 = pneg %p2532_p0 }
  0x22   : > { %p2538_p7 = pnand %p2536_p5, %p2533_p3 }
  0x24   : > { %2541 = shalt.err (!%p2538_p7)
}
  0x25   : > { %s2542_s18 = scalar_lea.vmem %s351_s13, 16  ;;  %s2549_s28 = scalar_lea.vmem %s351_s13, 32 }
  0x26   : > { %p2543_p10 = scmp.ne.s32.totalorder %s351_s13, %s2542_s18  ;;  %p2550_p2 = scmp.lt.s32.totalorder %s351_s13, %s351_s13 }
  0x27   : > { %p2551_p6 = scmp.lt.s32.totalorder %s2549_s28, %s2542_s18 }
  0x28   : > { %p2545_p9 = pnand %p2543_p10, %p2531_p13 }
  0x29   : > { %p2552_p4 = por %p2551_p6, %p2550_p2 }
  0x2a   : > { %p2546_p1 = pneg %p2545_p9 }
  0x2c   : > { %p2553_p8 = pnand %p2552_p4, %p2546_p1 }
  0x2e   : > { %2556 = shalt.err (!%p2553_p8)
}
  0x2f   : > { %2444 = dma.hbm_to_vmem [thread:$0]  (!%p2818_p11), %s3277_s7, 16, %s351_s13, [#allocation6]  }
  0x30   : > { %s2557_s30 = scalar_lea.hbm %s3259_s9, 16 }
  0x31   : > { %p2558_p9 = scmp.ne.s32.totalorder %s3259_s9, %s2557_s30  ;;  %p2564_p4 = scmp.lt.u32.totalorder %s2557_s30, %s3259_s9 }
  0x33   : > { %p2560_p2 = pnand %p2558_p9, %p2531_p13 }
  0x35   : > { %p2561_p1 = pneg %p2560_p2 }
  0x37   : > { %p2566_p6 = pnand %p2564_p4, %p2561_p1 }
  0x39   : > { %2569 = shalt.err (!%p2566_p6)
}
  0x3a   : > { %s2570_s13 = scalar_lea.vmem %s2822_s15, 16  ;;  %s2577_s12 = scalar_lea.vmem %s2822_s15, 32 }
  0x3b   : > { %p2571_p8 = scmp.ne.s32.totalorder %s2822_s15, %s2570_s13  ;;  %p2578_p3 = scmp.lt.s32.totalorder %s2822_s15, %s2822_s15 }
  0x3c   : > { %p2579_p5 = scmp.lt.s32.totalorder %s2577_s12, %s2570_s13 }
  0x3d   : > { %p2573_p12 = pnand %p2571_p8, %p2531_p13 }
  0x3e   : > { %p2580_p7 = por %p2579_p5, %p2578_p3 }
  0x3f   : > { %p2574_p0 = pneg %p2573_p12 }
  0x41   : > { %p2581_p10 = pnand %p2580_p7, %p2574_p0 }
  0x43   : > { %2584 = shalt.err (!%p2581_p10)
}
  0x44   : > { %2447 = dma.hbm_to_vmem [thread:$0]  (!%p2818_p11), %s3259_s9, 16, %s2822_s15, [#allocation6]  }
  0x45   : > { %s3278_s20 = ssub.s32 %s2685_s24, %s2825_s17  ;;  %s36_s26 = sadd.s32 1, %s2681_s23 }
  0x46   : > { %p34_p13 = scmp.eq.s32.totalorder %s3278_s20, 0  ;;  %p43_p9 = scmp.ne.s32.totalorder %s2681_s23, %s2677_s22 }
  0x47   : > { %p44_p2 = scmp.eq.s32.totalorder %s2685_s24, 0  ;;  %p3279_p4 = scmp.eq.s32.totalorder %s2790_s25, 1 }
  0x48   : > { %s2885_s16 = scalar_select %p34_p13, %s2681_s23, %s36_s26  }
  0x49   : > { %p45_p1 = por %p44_p2, %p43_p9  ;;  %p2889_p6 = por %p3279_p4, %p43_p9 }
  0x4a   : > { %p2458_p8 = scmp.lt.s32.totalorder %s2685_s24, 2  ;;  %s381_s14 = sand.u32 1, %s2681_s23  }
  0x4b   : > { %s2225_s18 = sshll.u32 %s381_s14, 3  ;;  %s2226_s28 = sshll.u32 %s2685_s24, 7 }
  0x4c   : > { %s2899_s15 = scalar_lea.hbm %s3250_s0, %s2226_s28  ;;  %s385_s19 = scalar_lea.vmem [#allocation2], %s2225_s18 }
  0x4d   : > { %s392_s21 = sshll.u32 %s385_s19, 4  ;;  %p2903_p11 = pnand %p2458_p8, %p45_p1  ;;  %s2901_s21 = int_to_ptr.vmem [resolvable:$true] %s392_s21 }
  0x4e   : > { %s382_s26 = scalar_lea.sflag [#allocation3], %s381_s14  ;;  %s2585_s7 = scalar_lea.hbm %s2899_s15, 128 }
  0x4f   : > { %p2586_p12 = scmp.ne.s32.totalorder %s2899_s15, %s2585_s7  ;;  %p2587_p0 = pneg %p2903_p11 }
  0x50   : > { %s2590_s13 = scalar_lea.hbm %s3250_s0, 256  ;;  %p2591_p7 = scmp.lt.u32.totalorder %s2899_s15, %s3250_s0 }
  0x51   : > { %p2588_p3 = pnand %p2587_p0, %p2586_p12  ;;  %p2592_p10 = scmp.lt.u32.totalorder %s2590_s13, %s2585_s7 }
  0x52   : > { %p2594_p9 = scmp.lt.u32.totalorder %s2585_s7, %s2899_s15 }
  0x53   : > { %p2589_p5 = pneg %p2588_p3  ;;  %p2593_p13 = por %p2592_p10, %p2591_p7 }
  0x55   : > { %p2595_p2 = por %p2594_p9, %p2593_p13 }
  0x57   : > { %p2596_p1 = pnand %p2595_p2, %p2589_p5 }
  0x59   : > { %2599 = shalt.err (!%p2596_p1)
}
  0x5a   : > { %s2600_s14 = scalar_lea.vmem %s2901_s21, 128  ;;  %s2689_s28 = smov [#allocation2]  }
  0x5b   : > { %p2601_p4 = scmp.ne.s32.totalorder %s2901_s21, %s2600_s14  ;;  %s2605_s18 = sshll.u32 %s2689_s28, 4  ;;  %s2606_s18 = int_to_ptr.vmem [resolvable:$false] %s2605_s18 }
  0x5c   : > { %s2607_s12 = scalar_lea.vmem %s2606_s18, 256  ;;  %p2608_p3 = scmp.lt.s32.totalorder %s2901_s21, %s2606_s18 }
  0x5d   : > { %p2603_p8 = pnand %p2601_p4, %p2587_p0  ;;  %p2609_p7 = scmp.lt.s32.totalorder %s2607_s12, %s2600_s14 }
  0x5f   : > { %p2604_p12 = pneg %p2603_p8  ;;  %p2610_p10 = por %p2609_p7, %p2608_p3 }
  0x61   : > { %p2611_p13 = pnand %p2610_p10, %p2604_p12 }
  0x63   : > { %2614 = shalt.err (!%p2611_p13)
}
  0x64   : > { %2451 = dma.hbm_to_vmem [thread:$0]  (!%p2903_p11), %s2899_s15, 128, %s2901_s21, %s382_s26  }
  0x65   : > { %p3282_p5 = scmp.ne.s32.totalorder %s3275_s29, 0 }
  0x66   : > { %s2935_s7 = sand.u32 (!%p3282_p5), 1, %s2677_s22   ;;  %p3283_p0 = scmp.ne.s32.totalorder (!%p3282_p5), %s3272_s27, 0 }
  0x67   : > { %407 = sbr.rel (%p3282_p5) target bundleno = 2620 (0xa3c), region = 68  ;;  %s2228_s13 = sshll.u32 (!%p3282_p5), %s2935_s7, 3 }
  0x68   : > { %s410_s19 = scalar_lea.sflag (!%p3282_p5), [#allocation3], %s2935_s7  ;;  %s413_s14 = scalar_lea.vmem (!%p3282_p5), [#allocation2], %s2228_s13 }
  0x6e   : > { %2660 = dma.done.wait (%p3283_p0), %s410_s19, 128  }
  0x6f   : > { %2662 = vsyncadd (%p3283_p0), %s410_s19, 4294967168  ;;  %p3284_p11 = scmp.eq.s32.totalorder %s2790_s25, 0 }
  0x71   : > { %2664 = dma.done.wait (%p3284_p11), [#allocation6], 32   ;;  %p3285_p9 = pmov %p3284_p11 }
  0x72   : > { %vm472_vm0 = vcmask 261120   ;;  %v2949_v0 = vld [vmem:[%s413_s14] sm:$0xff]  ;;  %v503_v9 = vld [vmem:[%s3254_s4 + $0x10] sm:$0xff]  ;;  %v2690_v10 = vmov 0.0|0.0   ;;  %v504_v12 = vld [vmem:[%s3254_s4 + $0x18] sm:$0xff]  ;;  %vm2691_vm1 = vmmov 0   ;;  %v600_v33 = vlaneseq }
  0x73   : > { %2666 = vsyncadd (%p3285_p9), [#allocation6], 4294967264  ;;  %v473_v1 = vsel %vm472_vm0, %v2949_v0, 0.0  ;;  %v501_v7 = vld [vmem:[%s3254_s4] sm:$0xff]  ;;  %v502_v8 = vld [vmem:[%s3254_s4 + $0x8] sm:$0xff]  ;;  %2399 = vmatprep.subr.bf16.mxu1 %v2690_v10  ;;  %v2692_v13 = vmov 0.0   ;;  %v2403_v14 = vpack.c.bf16 %v504_v12, %v503_v9 }
  0x74   : > { %474 = vadd.xlane.f32.xlu0 %v473_v1  ;;  %v2400_v11 = vpack.c.bf16 %v502_v8, %v501_v7  ;;  %2315 = vmatprep.mubr.msk.f32.mxu1 %vm2691_vm1, %v2692_v13  ;;  %v2978_v19 = vld [vmem:[%s3252_s2] ss:$0 sm:$0xff]  ;;  %s2693_s21 = smov 104   ;;  %s2694_s20 = smov 120   ;;  %v2698_v31 = vmov 1983009808  }
  0x75   : > { %2328 = vmatprep.subr.mxu0 %v2692_v13  ;;  %2330 = vmatprep.mubr.msk.f32.mxu0 %vm2691_vm1, %v2692_v13  ;;  %v2983_v21 = vld [vmem:[%s3253_s3] ss:$0 sm:$0xff]  ;;  %s2695_s26 = smov 112   ;;  %s2696_s28 = smov 96   ;;  %v598_v32 = vunpack.c.l.s4 %v2698_v31  ;;  %v601_v35 = vshrl.u32 %v600_v33, 7  ;;  %vm1027_vm2 = vcmask 64512  }
  0x76   : > { %2401 = vmatpush3.bf16.msra.mxu1 %v2400_v11  ;;  %v2234_v24 = vld [vmem:[%s3255_s5] ss:$0 sm:$0xff]  ;;  %s2697_s18 = smov 64   ;;  %v2699_v36 = vmov 1934713408   ;;  %p465_p2 = scmp.lt.s32.totalorder %s2790_s25, 1 }
  0x77   : > { %2402 = vmatprep.subr.bf16.mxu1 %v2690_v10  ;;  %v599_v34 = vunpack.c.0.s8 %v598_v32  ;;  %v630_v37 = vunpack.c.l.s4 %v2699_v36  ;;  %s2700_s19 = smov 16   ;;  %s2701_s14 = smov 8   ;;  %vm1827_vm3 = vcmask 130048   ;;  %vm1829_vm4 = vcmask 195584  }
  0x78   : > { %s466_s12 = scalar_select %p465_p2, %s2790_s25, 1  ;;  %vm2032_vm5 = vcmask 523264  }
  0x79   : > { %v3005_v41 = vsub.s32 %v599_v34, %v601_v35  ;;  %v631_v44 = vunpack.c.0.s8 %v630_v37  ;;  %s2109_s29 = scalar_lea.sflag [#allocation4], %s2935_s7 }
  0x7a   : > { %2404 = vmatpush3.bf16.msra.mxu1 %v2403_v14  ;;  %s467_s27 = scalar_lea.vmem %s3251_s1, %s466_s12 }
  0x7b   : > { %2318 = vmatprep.subr.mxu1 %v2692_v13  ;;  %v3015_v50 = vsub.s32 %v631_v44, %v601_v35 }
 0x101   : > { %v475_v2 = vpop.xlane.xlu0 %474 }
 0x102   : > { %v477_v3 = vmul.f32 0.03125, %v475_v2 }
 0x104   : > { %v478_v4 = vsub.f32 %v2949_v0, %v477_v3 }
 0x106   : > { %v479_v5 = vmul.f32 %v478_v4, %v478_v4 }
 0x108   : > { %v480_v6 = vsel %vm472_vm0, %v479_v5, 0.0 }
 0x109   : > { %481 = vadd.xlane.f32.xlu0 %v480_v6 }
 0x196   : > { %v482_v15 = vpop.xlane.xlu0 %481 }
 0x197   : > { %v483_v16 = vmul.f32 0.03125, %v482_v15 }
 0x199   : > { %v484_v17 = vadd.f32 1e-06, %v483_v16 }
 0x19b   : > { %2509 = vrsqrt.f32 %v484_v17 }
 0x1a5   : > { %v2510_v18 = vpop.eup %2509 }
 0x1a6   : > { %v486_v20 = vmul.f32 %v2510_v18, %v478_v4 }
 0x1a8   : > { %v493_v22 = vmul.f32 %v2978_v19, %v486_v20 }
 0x1aa   : > { %v500_v23 = vadd.f32 %v2983_v21, %v493_v22 }
 0x1ac   : > { %2316 = vmatmul.mubr.msk.f32.vlgmr.msra.gmra.mrb[0].mxu1 %vm472_vm0, %v500_v23 }
 0x1ad   : > { %2320 = vmatprep.mubr.msk.f32.mxu1 %vm2691_vm1, %v2692_v13 }
 0x27f   : > { %v581_v25 = vpop.f32.mrb[0].mxu1 }
 0x280   : > { %v582_v26 = vadd.f32 %v2234_v24, %v581_v25  ;;  %v2317_v27 = vpop.f32.mrb[1].mxu1 }
 0x282   : > { %592 = vrot.lane.b32.xlu0 %v582_v26, %s2693_s21  ;;  %586 = vrot.lane.b32.xlu1 %v582_v26, %s2694_s20 }
 0x286   : > { %589 = vrot.lane.b32.xlu1 %v582_v26, %s2695_s26  ;;  %s2264_s26 = sshll.u32 %s2790_s25, 7 }
 0x28a   : > { %731 = vrot.lane.b32.xlu1 %v582_v26, %s2696_s28 }
 0x2f4   : > { %v2993_v28 = vpop.permute.xlu1 %586  ;;  %v2999_v30 = vpop.permute.xlu0 %592 }
 0x2f5   : > { %733 = vrot.lane.b32.xlu1 %v2993_v28, %s2696_s28  ;;  %v611_v42 = vcombine.low %v2993_v28, %v2999_v30  ;;  %v612_v43 = vcombine.high %v2993_v28, %v2999_v30 }
 0x2f7   : > { %v619_v48 = vrot.slane %v611_v42, %v3005_v41  ;;  %v626_v49 = vrot.slane %v612_v43, %v3005_v41 }
 0x2f8   : > { %v2996_v29 = vpop.permute.xlu1 %589 }
 0x2f9   : > { %735 = vrot.lane.b32.xlu1 %v2996_v29, %s2696_s28  ;;  %v595_v38 = vcombine.low %v582_v26, %v2996_v29  ;;  %v596_v39 = vcombine.high %v582_v26, %v2996_v29 }
 0x2fb   : > { %v603_v45 = vrot.slane %v595_v38, %v3005_v41  ;;  %v610_v46 = vrot.slane %v596_v39, %v3005_v41 }
 0x2fc   : > { %v732_v40 = vpop.permute.xlu1 %731 }
 0x2fd   : > { %737 = vrot.lane.b32.xlu1 %v2999_v30, %s2696_s28  ;;  %v627_v51 = vcombine.low %v603_v45, %v619_v48  ;;  %v628_v52 = vcombine.high %v603_v45, %v619_v48  ;;  %v643_v53 = vcombine.low %v610_v46, %v626_v49  ;;  %v644_v54 = vcombine.high %v610_v46, %v626_v49  ;;  %s464_s28 = scalar_lea.vmem [#allocation8], %s2228_s13  ;;  %s2703_s13 = smov [#allocation8]  }
 0x2fe   : > { %s2619_s15 = sshll.u32 %s2703_s13, 4  ;;  %s2620_s15 = int_to_ptr.vmem [resolvable:$false] %s2619_s15 }
 0x2ff   : > { %v635_v58 = vrot.slane %v627_v51, %v3015_v50  ;;  %v642_v59 = vrot.slane %v628_v52, %v3015_v50  ;;  %v651_v60 = vrot.slane %v643_v53, %v3015_v50  ;;  %v658_v61 = vrot.slane %v644_v54, %v3015_v50  ;;  %s2621_s21 = scalar_lea.vmem %s2620_s15, 256 }
 0x301   : > { %879 = vrot.lane.b32.xlu1 %v582_v26, %s2697_s18  ;;  %v663_v6 = vcombine.low %v635_v58, %v642_v59  ;;  %v2236_v7 = vcombine.high %v635_v58, %v642_v59  ;;  %v679_v8 = vcombine.low %v651_v60, %v658_v61  ;;  %v2237_v9 = vcombine.high %v651_v60, %v658_v61 }
 0x303   : > { %v670_v22 = vrot.slane %v663_v6, %v3005_v41  ;;  %v678_v23 = vrot.slane %v2236_v7, %v3005_v41  ;;  %v686_v24 = vrot.slane %v679_v8, %v3005_v41  ;;  %v694_v25 = vrot.slane %v2237_v9, %v3005_v41 }
 0x305   : > { %v695_v37 = vcombine.low %v670_v22, %v678_v23  ;;  %v711_v38 = vcombine.low %v686_v24, %v694_v25  ;;  %v696_v39 = vcombine.high %v670_v22, %v678_v23 }
 0x307   : > { %v703_v51 = vrot.slane %v695_v37, %v3015_v50  ;;  %v719_v52 = vrot.slane %v711_v38, %v3015_v50  ;;  %v710_v53 = vrot.slane %v696_v39, %v3015_v50 }
 0x309   : > { %v728_v60 = vcombine.high %v703_v51, %v719_v52 }
 0x367   : > { %v734_v47 = vpop.permute.xlu1 %733 }
 0x36b   : > { %v736_v55 = vpop.permute.xlu1 %735 }
 0x36c   : > { %v743_v56 = vcombine.low %v732_v40, %v736_v55  ;;  %v744_v57 = vcombine.high %v732_v40, %v736_v55  ;;  %v712_v40 = vcombine.high %v686_v24, %v694_v25 }
 0x36e   : > { %v751_v2 = vrot.slane %v743_v56, %v3005_v41  ;;  %v758_v3 = vrot.slane %v744_v57, %v3005_v41  ;;  %v726_v54 = vrot.slane %v712_v40, %v3015_v50  ;;  %v727_v57 = vcombine.low %v703_v51, %v719_v52 }
 0x36f   : > { %v738_v62 = vpop.permute.xlu1 %737 }
 0x370   : > { %v759_v63 = vcombine.low %v734_v47, %v738_v62  ;;  %v760_v1 = vcombine.high %v734_v47, %v738_v62  ;;  %v729_v58 = vcombine.low %v710_v53, %v726_v54  ;;  %v730_v62 = vcombine.high %v710_v53, %v726_v54 }
 0x372   : > { %v767_v4 = vrot.slane %v759_v63, %v3005_v41  ;;  %v774_v5 = vrot.slane %v760_v1, %v3005_v41  ;;  %v2250_v63 = vld [vmem:[%s467_s27] ss:$0 sm:$0xff]  ;;  %s2702_s27 = smov 24  }
 0x374   : > { %v775_v11 = vcombine.low %v751_v2, %v767_v4  ;;  %v776_v12 = vcombine.high %v751_v2, %v767_v4  ;;  %v791_v14 = vcombine.low %v758_v3, %v774_v5  ;;  %v792_v15 = vcombine.high %v758_v3, %v774_v5 }
 0x376   : > { %v783_v16 = vrot.slane %v775_v11, %v3015_v50  ;;  %v790_v17 = vrot.slane %v776_v12, %v3015_v50  ;;  %v799_v18 = vrot.slane %v791_v14, %v3015_v50  ;;  %v806_v20 = vrot.slane %v792_v15, %v3015_v50 }
 0x378   : > { %v811_v26 = vcombine.low %v783_v16, %v790_v17  ;;  %v2238_v27 = vcombine.high %v783_v16, %v790_v17  ;;  %v827_v31 = vcombine.low %v799_v18, %v806_v20  ;;  %v2239_v32 = vcombine.high %v799_v18, %v806_v20  ;;  %v880_v20 = vpop.permute.xlu1 %879 }
 0x37a   : > { %v818_v33 = vrot.slane %v811_v26, %v3005_v41  ;;  %v826_v34 = vrot.slane %v2238_v27, %v3005_v41  ;;  %v834_v35 = vrot.slane %v827_v31, %v3005_v41  ;;  %v842_v36 = vrot.slane %v2239_v32, %v3005_v41 }
 0x37c   : > { %v843_v42 = vcombine.low %v818_v33, %v826_v34  ;;  %v859_v43 = vcombine.low %v834_v35, %v842_v36  ;;  %v844_v44 = vcombine.high %v818_v33, %v826_v34  ;;  %v860_v45 = vcombine.high %v834_v35, %v842_v36 }
 0x37e   : > { %v851_v46 = vrot.slane %v843_v42, %v3015_v50  ;;  %v867_v47 = vrot.slane %v859_v43, %v3015_v50  ;;  %v858_v48 = vrot.slane %v844_v44, %v3015_v50  ;;  %v874_v49 = vrot.slane %v860_v45, %v3015_v50 }
 0x380   : > { %v875_v55 = vcombine.low %v851_v46, %v867_v47  ;;  %v877_v56 = vcombine.low %v858_v48, %v874_v49  ;;  %v876_v59 = vcombine.high %v851_v46, %v867_v47  ;;  %v878_v61 = vcombine.high %v858_v48, %v874_v49 }
 0x382   : > { %2319 = vmatpush3.xpose.msk.msra.mxu1 %vm1027_vm2, %v875_v55  ;;  %2329 = vmatpush3.xpose.msk.msra.mxu0 %vm1027_vm2, %v877_v56 }
 0x383   : > { %2323 = vmatprep.subr.mxu1 %v2692_v13  ;;  %2338 = vmatprep.subr.mxu0 %v2692_v13 }
 0x385   : > { %2321 = vmatmul.mubr.msk.f32.vlgmr.msra.gmra.mrb[2].mxu1 %vm1027_vm2, %v727_v57  ;;  %2331 = vmatmul.mubr.msk.f32.vlgmr.msra.gmra.mrb[0].mxu0 %vm1027_vm2, %v729_v58 }
 0x386   : > { %2324 = vmatpush3.xpose.msk.msra.mxu1 %vm1027_vm2, %v876_v59  ;;  %2325 = vmatprep.mubr.msk.f32.mxu1 %vm2691_vm1, %v2692_v13 }
 0x387   : > { %2333 = vmatprep.subr.mxu1 %v2692_v13  ;;  %2340 = vmatprep.mubr.msk.f32.mxu0 %vm2691_vm1, %v2692_v13 }
 0x389   : > { %2326 = vmatmul.mubr.msk.f32.vlgmr.msra.gmra.mrb[4].mxu1 %vm1027_vm2, %v728_v60 }
 0x38a   : > { %2334 = vmatpush3.xpose.msk.msra.mxu1 %vm1027_vm2, %v878_v61  ;;  %2335 = vmatprep.mubr.msk.f32.mxu1 %vm2691_vm1, %v2692_v13 }
 0x38b   : > { %2343 = vmatprep.subr.mxu1 %v2692_v13 }
 0x38d   : > { %2336 = vmatmul.mubr.msk.f32.vlgmr.msra.gmra.mrb[6].mxu1 %vm1027_vm2, %v730_v62 }
 0x38e   : > { %2345 = vmatprep.mubr.msk.f32.mxu1 %vm2691_vm1, %v2692_v13 }
 0x458   : > { %v1100_v1 = vpop.f32.mrb[2].mxu1  ;;  %v1252_v2 = vpop.f32.mrb[0].mxu0 }
 0x459   : > { %v1338_v3 = vadd.f32 %v2250_v63, %v1100_v1  ;;  %v2322_v4 = vpop.f32.mrb[3].mxu1  ;;  %v2332_v5 = vpop.f32.mrb[1].mxu0  ;;  %v1340_v6 = vadd.f32 %v2250_v63, %v1252_v2 }
 0x45b   : > { %v1342_v7 = vsel %vm1027_vm2, %v1338_v3, -inf  ;;  %v1348_v12 = vsel %vm1027_vm2, %v1340_v6, -inf }
 0x45c   : > { %1343 = vmax.xlane.f32.xlu1 %v1342_v7  ;;  %v1176_v8 = vpop.f32.mrb[4].mxu1 }
 0x45d   : > { %v1339_v9 = vadd.f32 %v2250_v63, %v1176_v8  ;;  %v2327_v11 = vpop.f32.mrb[5].mxu1 }
 0x45f   : > { %v1345_v14 = vsel %vm1027_vm2, %v1339_v9, -inf }
 0x460   : > { %1349 = vmax.xlane.f32.xlu1 %v1348_v12  ;;  %1346 = vmax.xlane.f32.xlu0 %v1345_v14  ;;  %v1328_v15 = vpop.f32.mrb[6].mxu1 }
 0x461   : > { %v1341_v16 = vadd.f32 %v2250_v63, %v1328_v15  ;;  %v2337_v17 = vpop.f32.mrb[7].mxu1 }
 0x463   : > { %v1351_v18 = vsel %vm1027_vm2, %v1341_v16, -inf }
 0x464   : > { %1352 = vmax.xlane.f32.xlu0 %v1351_v18 }
 0x471   : > { %883 = vrot.lane.b32.xlu1 %v2996_v29, %s2697_s18 }
 0x475   : > { %885 = vrot.lane.b32.xlu1 %v2999_v30, %s2697_s18 }
 0x47a   : > { %881 = vrot.lane.b32.xlu0 %v2993_v28, %s2697_s18  ;;  %s2122_s18 = sshll.u32 %s464_s28, 4  ;;  %s3207_s18 = int_to_ptr.vmem [resolvable:$true] %s2122_s18 }
 0x47b   : > { %s2615_s25 = scalar_lea.vmem %s3207_s18, 128  ;;  %p2622_p12 = scmp.lt.s32.totalorder %s3207_s18, %s2620_s15 }
 0x47c   : > { %p2616_p1 = scmp.ne.s32.totalorder %s3207_s18, %s2615_s25  ;;  %p2623_p3 = scmp.lt.s32.totalorder %s2621_s21, %s2615_s25 }
 0x47e   : > { %p2617_p4 = pnand %p2616_p1, %p2889_p6  ;;  %p2624_p7 = por %p2623_p3, %p2622_p12 }
 0x480   : > { %p2618_p8 = pneg %p2617_p4 }
 0x482   : > { %p2625_p10 = pnand %p2624_p7, %p2618_p8 }
 0x4e9   : > { %v1344_v22 = vpop.xlane.xlu1 %1343 }
 0x4ea   : > { %v1354_v23 = vsub.f32 %v1338_v3, %v1344_v22 }
 0x4ec   : > { %v1358_v24 = vmul.f32 1.442695, %v1354_v23 }
 0x4ed   : > { %v1350_v25 = vpop.xlane.xlu1 %1349  ;;  %v1347_v26 = vpop.xlane.xlu0 %1346 }
 0x4ee   : > { %2511 = vpow2.f32 %v1358_v24  ;;  %v1356_v27 = vsub.f32 %v1340_v6, %v1350_v25  ;;  %v1355_v31 = vsub.f32 %v1339_v9, %v1347_v26  ;;  %v1831_v24 = vld [vmem:[%s3256_s6] sm:$0xff]  ;;  %v1832_v25 = vld [vmem:[%s3256_s6 + $0x8] sm:$0xff] }
 0x4ef   : > { %v2406_v26 = vpack.c.bf16 %v1832_v25, %v1831_v24 }
 0x4f0   : > { %v1362_v32 = vmul.f32 1.442695, %v1356_v27  ;;  %v1360_v33 = vmul.f32 1.442695, %v1355_v31 }
 0x4f1   : > { %v884_v34 = vpop.permute.xlu1 %883  ;;  %v1353_v35 = vpop.xlane.xlu0 %1352 }
 0x4f2   : > { %2513 = vpow2.f32 %v1362_v32  ;;  %v1357_v29 = vsub.f32 %v1341_v16, %v1353_v35  ;;  %v891_v30 = vcombine.low %v880_v20, %v884_v34  ;;  %v892_v36 = vcombine.high %v880_v20, %v884_v34 }
 0x4f3   : > { %2515 = vpow2.f32 %v1360_v33 }
 0x4f4   : > { %v1364_v37 = vmul.f32 1.442695, %v1357_v29  ;;  %v899_v43 = vrot.slane %v891_v30, %v3005_v41  ;;  %v906_v44 = vrot.slane %v892_v36, %v3005_v41 }
 0x4f5   : > { %v886_v28 = vpop.permute.xlu1 %885  ;;  %v882_v38 = vpop.permute.xlu0 %881 }
 0x4f6   : > { %2517 = vpow2.f32 %v1364_v37  ;;  %v907_v39 = vcombine.low %v882_v38, %v886_v28  ;;  %v908_v40 = vcombine.high %v882_v38, %v886_v28 }
 0x4f8   : > { %v2512_v42 = vpop.eup %2511  ;;  %v915_v45 = vrot.slane %v907_v39, %v3005_v41  ;;  %v922_v46 = vrot.slane %v908_v40, %v3005_v41 }
 0x4f9   : > { %v1366_v47 = vsel %vm1027_vm2, %v2512_v42, 0.0 }
 0x4fa   : > { %v923_v48 = vcombine.low %v899_v43, %v915_v45  ;;  %v924_v49 = vcombine.high %v899_v43, %v915_v45  ;;  %v939_v51 = vcombine.low %v906_v44, %v922_v46  ;;  %v940_v52 = vcombine.high %v906_v44, %v922_v46  ;;  %1367 = vadd.xlane.f32.xlu0 %v1366_v47 }
 0x4fc   : > { %v2514_v53 = vpop.eup %2513  ;;  %v931_v54 = vrot.slane %v923_v48, %v3015_v50  ;;  %v938_v55 = vrot.slane %v924_v49, %v3015_v50  ;;  %v947_v56 = vrot.slane %v939_v51, %v3015_v50  ;;  %v954_v57 = vrot.slane %v940_v52, %v3015_v50 }
 0x4fd   : > { %v2516_v58 = vpop.eup %2515  ;;  %v1372_v59 = vsel %vm1027_vm2, %v2514_v53, 0.0 }
 0x4fe   : > { %v959_v60 = vcombine.low %v931_v54, %v938_v55  ;;  %v2240_v61 = vcombine.high %v931_v54, %v938_v55  ;;  %v975_v62 = vcombine.low %v947_v56, %v954_v57  ;;  %v2241_v63 = vcombine.high %v947_v56, %v954_v57  ;;  %1373 = vadd.xlane.f32.xlu0 %v1372_v59 }
 0x4ff   : > { %v1369_v1 = vsel %vm1027_vm2, %v2516_v58, 0.0 }
 0x500   : > { %v2518_v2 = vpop.eup %2517  ;;  %v966_v3 = vrot.slane %v959_v60, %v3005_v41  ;;  %v974_v4 = vrot.slane %v2240_v61, %v3005_v41  ;;  %v982_v5 = vrot.slane %v975_v62, %v3005_v41  ;;  %v990_v6 = vrot.slane %v2241_v63, %v3005_v41  ;;  %1370 = vadd.xlane.f32.xlu1 %v1369_v1  ;;  %v1833_v61 = vld [vmem:[%s3256_s6 + $0x10] sm:$0xff]  ;;  %v1834_v62 = vld [vmem:[%s3256_s6 + $0x18] sm:$0xff] }
 0x501   : > { %v1375_v7 = vsel %vm1027_vm2, %v2518_v2, 0.0 }
 0x502   : > { %1376 = vadd.xlane.f32.xlu0 %v1375_v7  ;;  %v991_v8 = vcombine.low %v966_v3, %v974_v4  ;;  %v1007_v9 = vcombine.low %v982_v5, %v990_v6  ;;  %v992_v11 = vcombine.high %v966_v3, %v974_v4  ;;  %v1008_v12 = vcombine.high %v982_v5, %v990_v6 }
 0x503   : > { %v2409_v4 = vpack.c.bf16 %v1834_v62, %v1833_v61 }
 0x504   : > { %v999_v14 = vrot.slane %v991_v8, %v3015_v50  ;;  %v1015_v15 = vrot.slane %v1007_v9, %v3015_v50  ;;  %v1006_v16 = vrot.slane %v992_v11, %v3015_v50  ;;  %v1022_v17 = vrot.slane %v1008_v12, %v3015_v50 }
 0x506   : > { %v1023_v18 = vcombine.low %v999_v14, %v1015_v15  ;;  %v1024_v20 = vcombine.high %v999_v14, %v1015_v15  ;;  %v1025_v22 = vcombine.low %v1006_v16, %v1022_v17  ;;  %v1026_v23 = vcombine.high %v1006_v16, %v1022_v17 }
 0x508   : > { %2339 = vmatpush3.msra.mxu0 %v1023_v18  ;;  %2344 = vmatpush3.msra.mxu1 %v1024_v20 }
 0x509   : > { %2341 = vmatmul.mubr.msk.f32.vlgmr.msra.gmra.mrb[2].mxu0 %vm1027_vm2, %v2512_v42  ;;  %2346 = vmatmul.mubr.msk.f32.vlgmr.msra.gmra.mrb[8].mxu1 %vm1027_vm2, %v2516_v58 }
 0x50a   : > { %2348 = vmatprep.subr.mxu0 %v2692_v13  ;;  %2353 = vmatprep.subr.mxu1 %v2692_v13 }
 0x50b   : > { %2349 = vmatpush3.msra.mxu0 %v1025_v22  ;;  %2354 = vmatpush3.msra.mxu1 %v1026_v23 }
 0x50c   : > { %2350 = vmatprep.mubr.msk.f32.mxu0 %vm2691_vm1, %v2692_v13  ;;  %2355 = vmatprep.mubr.msk.f32.mxu1 %vm2691_vm1, %v2692_v13 }
 0x50d   : > { %2351 = vmatmul.mubr.msk.f32.vlgmr.msra.gmra.mrb[4].mxu0 %vm1027_vm2, %v2514_v53  ;;  %2356 = vmatmul.mubr.msk.f32.vlgmr.msra.gmra.mrb[10].mxu1 %vm1027_vm2, %v2518_v2 }
 0x50e   : > { %2405 = vmatprep.subr.bf16.mxu0 %v2690_v10  ;;  %2366 = vmatprep.mubr.msk.f32.mxu0 %vm2691_vm1, %v2692_v13 }
 0x50f   : > { %2411 = vmatprep.subr.bf16.mxu1 %v2690_v10  ;;  %2377 = vmatprep.mubr.msk.f32.mxu1 %vm2691_vm1, %v2692_v13 }
 0x510   : > { %2407 = vmatpush3.bf16.msra.mxu0 %v2406_v26 }
 0x511   : > { %2408 = vmatprep.subr.bf16.mxu0 %v2690_v10 }
 0x514   : > { %2410 = vmatpush3.bf16.msra.mxu0 %v2409_v4 }
 0x515   : > { %2417 = vmatprep.subr.bf16.mxu0 %v2690_v10 }
 0x587   : > { %v1368_v27 = vpop.xlane.xlu0 %1367 }
 0x588   : > { %2519 = vrcp.f32 %v1368_v27 }
 0x58b   : > { %v1374_v31 = vpop.xlane.xlu0 %1373 }
 0x58c   : > { %2521 = vrcp.f32 %v1374_v31 }
 0x58d   : > { %v1371_v32 = vpop.xlane.xlu1 %1370 }
 0x58e   : > { %2523 = vrcp.f32 %v1371_v32 }
 0x58f   : > { %v1377_v33 = vpop.xlane.xlu0 %1376 }
 0x590   : > { %2525 = vrcp.f32 %v1377_v33 }
 0x592   : > { %v2520_v29 = vpop.eup %2519 }
 0x596   : > { %v2522_v37 = vpop.eup %2521 }
 0x598   : > { %v2524_v28 = vpop.eup %2523 }
 0x59a   : > { %v2526_v38 = vpop.eup %2525 }
 0x5dc   : > { %v1451_v34 = vpop.f32.mrb[2].mxu0  ;;  %v1524_v35 = vpop.f32.mrb[8].mxu1 }
 0x5dd   : > { %v2342_v30 = vpop.f32.mrb[3].mxu0  ;;  %v2347_v36 = vpop.f32.mrb[9].mxu1  ;;  %v1674_v42 = vmul.f32 %v2520_v29, %v1451_v34  ;;  %v1675_v43 = vmul.f32 %v2524_v28, %v1524_v35 }
 0x5de   : > { %v2258_v30 = vld [vmem:[#allocation5] ss:$0 sm:$0xff] }
 0x5e0   : > { %v1597_v39 = vpop.f32.mrb[4].mxu0  ;;  %v1670_v40 = vpop.f32.mrb[10].mxu1 }
 0x5e1   : > { %v1676_v44 = vmul.f32 %v2522_v37, %v1597_v39  ;;  %v1677_v45 = vmul.f32 %v2526_v38, %v1670_v40  ;;  %v2352_v46 = vpop.f32.mrb[5].mxu0  ;;  %v2357_v47 = vpop.f32.mrb[11].mxu1 }
 0x5e2   : > { %v1934_v46 = vld [vmem:[%s3258_s8 + $0x10] sm:$0xff]  ;;  %v1935_v47 = vld [vmem:[%s3258_s8 + $0x18] sm:$0xff] }
 0x5e3   : > { %v1678_v48 = vcombine.low %v1674_v42, %v1676_v44  ;;  %v1679_v49 = vcombine.high %v1674_v42, %v1676_v44  ;;  %v1694_v51 = vcombine.low %v1675_v43, %v1677_v45  ;;  %v1695_v52 = vcombine.high %v1675_v43, %v1677_v45 }
 0x5e5   : > { %v1686_v53 = vrot.slane %v1678_v48, %v3005_v41  ;;  %v1693_v54 = vrot.slane %v1679_v49, %v3005_v41  ;;  %v1702_v55 = vrot.slane %v1694_v51, %v3005_v41  ;;  %v1709_v56 = vrot.slane %v1695_v52, %v3005_v41  ;;  %v2017_v49 = vld [vmem:[%s3260_s10] sm:$0xff]  ;;  %v2018_v51 = vld [vmem:[%s3260_s10 + $0x8] sm:$0xff]  ;;  %v2019_v52 = vld [vmem:[%s3260_s10 + $0x10] sm:$0xff] }
 0x5e6   : > { %v2415_v48 = vpack.c.bf16 %v1935_v47, %v1934_v46 }
 0x5e7   : > { %v1710_v57 = vcombine.low %v1686_v53, %v1702_v55  ;;  %v1711_v58 = vcombine.high %v1686_v53, %v1702_v55  ;;  %v1726_v59 = vcombine.low %v1693_v54, %v1709_v56  ;;  %v1727_v60 = vcombine.high %v1693_v54, %v1709_v56  ;;  %v2020_v54 = vld [vmem:[%s3260_s10 + $0x18] sm:$0xff]  ;;  %v2021_v56 = vld [vmem:[%s3260_s10 + $0x20] sm:$0xff] }
 0x5e8   : > { %v2418_v53 = vpack.c.bf16 %v2018_v51, %v2017_v49  ;;  %v2421_v55 = vpack.c.bf16 %v2020_v54, %v2019_v52 }
 0x5e9   : > { %v1718_v63 = vrot.slane %v1710_v57, %v3015_v50  ;;  %v1725_v1 = vrot.slane %v1711_v58, %v3015_v50  ;;  %v1734_v2 = vrot.slane %v1726_v59, %v3015_v50  ;;  %v1741_v3 = vrot.slane %v1727_v60, %v3015_v50  ;;  %v2022_v57 = vld [vmem:[%s3260_s10 + $0x28] sm:$0xff] }
 0x5ea   : > { %v2424_v58 = vpack.c.bf16 %v2022_v57, %v2021_v56 }
 0x5eb   : > { %v1746_v5 = vcombine.low %v1718_v63, %v1725_v1  ;;  %v2255_v6 = vcombine.high %v1718_v63, %v1725_v1  ;;  %v1762_v7 = vcombine.low %v1734_v2, %v1741_v3  ;;  %v2256_v8 = vcombine.high %v1734_v2, %v1741_v3  ;;  %v2023_v3 = vld [vmem:[%s3260_s10 + $0x30] sm:$0xff] }
 0x5ed   : > { %v1753_v9 = vrot.slane %v1746_v5, %v3005_v41  ;;  %v1761_v11 = vrot.slane %v2255_v6, %v3005_v41  ;;  %v1769_v12 = vrot.slane %v1762_v7, %v3005_v41  ;;  %v1777_v14 = vrot.slane %v2256_v8, %v3005_v41  ;;  %v2259_v5 = vld [vmem:[#allocation7] ss:$0 sm:$0xff]  ;;  %v2261_v8 = vld [vmem:[%s3261_s11] ss:$0 sm:$0xff] }
 0x5ef   : > { %v1779_v15 = vcombine.high %v1753_v9, %v1761_v11  ;;  %v1795_v16 = vcombine.high %v1769_v12, %v1777_v14  ;;  %v1778_v17 = vcombine.low %v1753_v9, %v1761_v11  ;;  %v1794_v18 = vcombine.low %v1769_v12, %v1777_v14 }
 0x5f1   : > { %v1793_v20 = vrot.slane %v1779_v15, %v3015_v50  ;;  %v1809_v22 = vrot.slane %v1795_v16, %v3015_v50  ;;  %v1786_v23 = vrot.slane %v1778_v17, %v3015_v50  ;;  %v1802_v24 = vrot.slane %v1794_v18, %v3015_v50 }
 0x5f3   : > { %v1812_v25 = vcombine.low %v1793_v20, %v1809_v22  ;;  %v1811_v26 = vcombine.high %v1786_v23, %v1802_v24  ;;  %v1813_v27 = vcombine.high %v1793_v20, %v1809_v22  ;;  %v1810_v31 = vcombine.low %v1786_v23, %v1802_v24 }
 0x5f5   : > { %1819 = vrot.lane.b32.xlu0 %v1812_v25, %s2700_s19  ;;  %1815 = vrot.lane.b32.xlu1 %v1811_v26, %s2701_s14  ;;  %s3286_s14 = sld [smem:[#allocation15_spill]] }
 0x5f9   : > { %1823 = vrot.lane.b32.xlu1 %v1813_v27, %s2702_s27 }
 0x5fb   : > { %s3205_s27 = scalar_lea.hbm %s3286_s14, %s2264_s26 }
 0x667   : > { %v1816_v41 = vpop.permute.xlu1 %1815  ;;  %v1820_v32 = vpop.permute.xlu0 %1819 }
 0x668   : > { %v1826_v33 = vsel %vm1027_vm2, %v1810_v31, %v1816_v41 }
 0x669   : > { %v1828_v35 = vsel %vm1827_vm3, %v1826_v33, %v1820_v32 }
 0x66b   : > { %v1824_v34 = vpop.permute.xlu1 %1823 }
 0x66c   : > { %v1830_v29 = vsel %vm1829_vm4, %v1828_v35, %v1824_v34 }
 0x66d   : > { %2367 = vmatmul.mubr.msk.f32.vlgmr.msra.gmra.mrb[6].mxu0 %vm472_vm0, %v1830_v29 }
 0x66e   : > { %2396 = vmatprep.mubr.msk.f32.mxu0 %vm2691_vm1, %v2692_v13  ;;  %v1932_v13 = vld [vmem:[%s3258_s8] sm:$0xff]  ;;  %2419 = vmatpush3.bf16.msra.mxu0 %v2418_v53 }
 0x66f   : > { %2420 = vmatprep.subr.bf16.mxu0 %v2690_v10 }
 0x672   : > { %2422 = vmatpush3.bf16.msra.mxu0 %v2421_v55 }
 0x673   : > { %2423 = vmatprep.subr.bf16.mxu0 %v2690_v10 }
 0x676   : > { %2425 = vmatpush3.bf16.msra.mxu0 %v2424_v58 }
 0x677   : > { %2426 = vmatprep.subr.bf16.mxu0 %v2690_v10 }
 0x740   : > { %v1904_v50 = vpop.f32.mrb[6].mxu0 }
 0x741   : > { %v1908_v36 = vadd.f32 %v1904_v50, %v2949_v0  ;;  %v2368_v37 = vpop.f32.mrb[7].mxu0  ;;  %v1933_v0 = vld [vmem:[%s3258_s8 + $0x8] sm:$0xff] }
 0x742   : > { %v2412_v45 = vpack.c.bf16 %v1933_v0, %v1932_v13 }
 0x743   : > { %v1916_v28 = vadd.f32 %v2258_v30, %v1908_v36 }
 0x744   : > { %2413 = vmatpush3.bf16.msra.mxu1 %v2412_v45 }
 0x745   : > { %v1917_v38 = vsel %vm472_vm0, %v1916_v28, 0.0  ;;  %2414 = vmatprep.subr.bf16.mxu1 %v2690_v10  ;;  %v2024_v10 = vld [vmem:[%s3260_s10 + $0x38] sm:$0xff] }
 0x746   : > { %1918 = vadd.xlane.f32.xlu1 %v1917_v38  ;;  %v2427_v4 = vpack.c.bf16 %v2024_v10, %v2023_v3 }
 0x748   : > { %2416 = vmatpush3.bf16.msra.mxu1 %v2415_v48  ;;  %2428 = vmatpush3.bf16.msra.mxu0 %v2427_v4 }
 0x7d3   : > { %v1919_v39 = vpop.xlane.xlu1 %1918 }
 0x7d4   : > { %v1920_v40 = vmul.f32 0.03125, %v1919_v39 }
 0x7d6   : > { %v1921_v42 = vsub.f32 %v1916_v28, %v1920_v40 }
 0x7d8   : > { %v1922_v43 = vmul.f32 %v1921_v42, %v1921_v42 }
 0x7da   : > { %v1923_v44 = vsel %vm472_vm0, %v1922_v43, 0.0 }
 0x7db   : > { %1924 = vadd.xlane.f32.xlu0 %v1923_v44 }
 0x868   : > { %v1925_v59 = vpop.xlane.xlu0 %1924 }
 0x869   : > { %v1926_v60 = vmul.f32 0.03125, %v1925_v59 }
 0x86b   : > { %v1927_v61 = vadd.f32 1e-06, %v1926_v60 }
 0x86d   : > { %2527 = vrsqrt.f32 %v1927_v61 }
 0x877   : > { %v2528_v62 = vpop.eup %2527 }
 0x878   : > { %v1929_v63 = vmul.f32 %v2528_v62, %v1921_v42 }
 0x87a   : > { %v1930_v1 = vmul.f32 %v2978_v19, %v1929_v63 }
 0x87c   : > { %v1931_v2 = vadd.f32 %v2983_v21, %v1930_v1 }
 0x87e   : > { %2378 = vmatmul.mubr.msk.f32.vlgmr.msra.gmra.mrb[12].mxu1 %vm472_vm0, %v1931_v2 }
 0x951   : > { %v2012_v6 = vpop.f32.mrb[12].mxu1 }
 0x952   : > { %v2013_v7 = vadd.f32 %v2259_v5, %v2012_v6  ;;  %v2379_v19 = vpop.f32.mrb[13].mxu1 }
 0x954   : > { %v2016_v21 = vmax.f32 %v2013_v7, 0.0 }
 0x956   : > { %2397 = vmatmul.mubr.msk.f32.vlgmr.msra.gmra.mrb[8].mxu0 %vm2032_vm5, %v2016_v21 }
 0xa29   : > { %v2102_v9 = vpop.f32.mrb[8].mxu0 }
 0xa2a   : > { %v2103_v11 = vadd.f32 %v2261_v8, %v2102_v9  ;;  %v2398_v12 = vpop.f32.mrb[9].mxu0 }
 0xa2c   : > { %v2106_v14 = vadd.f32 %v2103_v11, %v1916_v28 }
 0xa2e   : > { %2107 = vst.msk [vmem:[%s464_s28] sm:$0xff] %vm472_vm0, %v2106_v14 }
 0xa2f   : > { %2628 = shalt.err (!%p2625_p10)
}
 0xa30   : > { %s2629_s7 = scalar_lea.hbm %s3205_s27, 128  ;;  %s2633_s28 = scalar_lea.hbm %s3286_s14, 256 }
 0xa31   : > { %p2630_p13 = scmp.ne.s32.totalorder %s3205_s27, %s2629_s7  ;;  %p2634_p11 = scmp.lt.u32.totalorder %s3205_s27, %s3286_s14 }
 0xa32   : > { %p2635_p9 = scmp.lt.u32.totalorder %s2633_s28, %s2629_s7  ;;  %p2637_p1 = scmp.lt.u32.totalorder %s2629_s7, %s3205_s27 }
 0xa33   : > { %p2631_p5 = pnand %p2630_p13, %p2889_p6 }
 0xa34   : > { %p2636_p2 = por %p2635_p9, %p2634_p11 }
 0xa35   : > { %p2632_p0 = pneg %p2631_p5 }
 0xa36   : > { %p2638_p4 = por %p2637_p1, %p2636_p2 }
 0xa38   : > { %p2639_p8 = pnand %p2638_p4, %p2632_p0 }
 0xa3a   : > { %2642 = shalt.err (!%p2639_p8)
}
 0xa3b   : > { %2439 = dma.vmem_to_hbm [thread:$0]  (%p2889_p6), %s3207_s18, 128, %s3205_s27, %s2109_s29  }
 0xa3c PF: > { %s3287_s25 = sld [smem:[#allocation12_spill]]  ;;  %s3288_s13 = sld [smem:[#allocation13_spill]] }
 0xa3d   : > { %p3290_p3 = scmp.ge.s32.totalorder %s2685_s24, 2 }
 0xa42   : > { %s2134_s15 = sand.u32 1, %s3287_s25   ;;  %p3289_p12 = scmp.ne.s32.totalorder %s3288_s13, 0 }
 0xa43   : > { %s2135_s21 = scalar_lea.sflag [#allocation4], %s2134_s15 }
 0xa44   : > { %p2453_p7 = pnand %p3290_p3, %p3289_p12 }
 0xa46   : > { %2668 = dma.done.wait (!%p2453_p7), %s2135_s21, 128  }
 0xa47   : > { %2670 = vsyncadd (!%p2453_p7), %s2135_s21, 4294967168  ;;  %p26_p10 = scmp.ge.s32.totalorder %s2825_s17, 4   ;;  %s3291_s21 = smov %s2677_s22 }
 0xa48   : > { %s3292_s22 = smov %s2681_s23  ;;  %s3293_s23 = smov %s2885_s16 }
 0xa49   : > { %s3294_s24 = smov %s2825_s17  ;;  %28 = sbr.rel (!%p26_p10) target bundleno = 9 (0x9), region = 124 }
 0xa50   :  { %2140 = vsyncpa [#allocation3], 1 }
 0xa51   :  { %2142 = vsyncpa [#allocation3 + $0x1], 1 }
 0xa52   :  { %2143 = vsyncpa [#allocation6], 1 }
 0xa53   :  { %2144 = vsyncpa [#allocation4], 1 }
 0xa54   :  { %2146 = vsyncpa [#allocation4 + $0x1], 1 }

// kernel: tpu_custom_call.1
= control target key start
LH: loop header
LB: loop body
LE: loop exit
PB: predicated region body
PF: predicated region fallthrough
CT: control target
= control target key end

     0   :  { %s3250_s0 = inlined_call_operand.hbm [shape: f32[16,32], index: 0, kind: input, shape index: {}]   ;;  %s3251_s1 = inlined_call_operand.vmem [shape: f32[2,1,1,8], index: 1, kind: input, shape index: {}]   ;;  %s3252_s2 = inlined_call_operand.vmem [shape: f32[1,32], index: 2, kind: input, shape index: {}]   ;;  %s3253_s3 = inlined_call_operand.vmem [shape: f32[1,32], index: 3, kind: input, shape index: {}]   ;;  %s3254_s4 = inlined_call_operand.vmem [shape: f32[32,96], index: 4, kind: input, shape index: {}]   ;;  %s3255_s5 = inlined_call_operand.vmem [shape: f32[1,96], index: 5, kind: input, shape index: {}]   ;;  %s3256_s6 = inlined_call_operand.vmem [shape: f32[32,32], index: 6, kind: input, shape index: {}]   ;;  %s3257_s7 = inlined_call_operand.hbm [shape: f32[1,32], index: 7, kind: input, shape index: {}]   ;;  %s3258_s8 = inlined_call_operand.vmem [shape: f32[32,64], index: 8, kind: input, shape index: {}]   ;;  %s3259_s9 = inlined_call_operand.hbm [shape: f32[1,64], index: 9, kind: input, shape index: {}]   ;;  %s3260_s10 = inlined_call_operand.vmem [shape: f32[64,32], index: 10, kind: input, shape index: {}]   ;;  %s3261_s11 = inlined_call_operand.vmem [shape: f32[1,32], index: 11, kind: input, shape index: {}]   ;;  %s3262_s12 = inlined_call_operand.hbm [shape: f32[16,32], index: 12, kind: output, shape index: {}]  }
   0x1   :  { %3269 = sst [smem:[#allocation14_spill]] %s3257_s7 }
   0x2   :  { %3270 = sst [smem:[#allocation15_spill]] %s3262_s12 }
   0x3   :  { %17 = vsyncpa [#allocation3], 0 }
   0x4   :  { %19 = vsyncpa [#allocation3 + $0x1], 0 }
   0x5   :  { %20 = vsyncpa [#allocation6], 0 }
   0x6   :  { %21 = vsyncpa [#allocation4], 0 }
   0x7   :  { %23 = vsyncpa [#allocation4 + $0x1], 0  ;;  %s2769_s21 = smov 0   ;;  %s2771_s22 = smov 0  }
   0x8   :  { %s2773_s23 = smov 0   ;;  %s2775_s24 = smov 0  }
   0x9 LB: > { %3271 = sst [smem:[#allocation12_spill]] %s2673_s21  ;;  %s2790_s25 = sadd.s32 4294967295, %s2685_s24   ;;  %s2685_s24 = sphi %s2775_s24, %s3294_s24   ;;  %s2681_s23 = sphi %s2773_s23, %s3293_s23   ;;  %s2677_s22 = sphi %s2771_s22, %s3292_s22   ;;  %s2673_s21 = sphi %s2769_s21, %s3291_s21  }
   0xa   : > { %s2220_s26 = sadd.s32 4294967294, %s2685_s24   ;;  %p49_p0 = scmp.ne.s32.totalorder %s2677_s22, %s2673_s21 }
   0xb   : > { %p3265_p1 = scmp.eq.s32.totalorder %s2790_s25, 0  ;;  %p315_p3 = scmp.eq.s32.totalorder %s2220_s26, 1 }
   0xc   : > { %p2221_p5 = scmp.ge.s32.totalorder %s2685_s24, 1  ;;  %p322_p7 = scmp.lt.s32.totalorder %s2685_s24, 3 }
   0xd   : > { %p2799_p4 = por %p3265_p1, %p49_p0  ;;  %p2804_p6 = por %p315_p3, %p49_p0 }
   0xe   : > { %p2809_p8 = pnand %p2221_p5, %p322_p7  ;;  %s2687_s30 = smov [#allocation5]  }
   0xf   : > { %s3272_s27 = scalar_select %p2799_p4, 1, 0 }
  0x10   : > { %s3273_s28 = scalar_select %p2804_p6, 1, 0 }
  0x11   : > { %s3275_s29 = scalar_select %p2809_p8, 1, 0 }
  0x12   : > { %3274 = sst [smem:[#allocation13_spill]] %s3273_s28  ;;  %s350_s13 = sshll.u32 %s2687_s30, 4  ;;  %s351_s13 = int_to_ptr.vmem [resolvable:$true] %s350_s13 }
  0x13   : > { %p2441_p10 = pneg %p2809_p8  ;;  %s2688_s14 = smov [#allocation7]  }
  0x14   : > { %s364_s15 = sshll.u32 %s2688_s14, 4  ;;  %s2825_s17 = sadd.s32 1, %s2685_s24   ;;  %s2822_s15 = int_to_ptr.vmem [resolvable:$true] %s364_s15 }
  0x15   : > { %p2818_p11 = pnand %p2441_p10, %p3265_p1  ;;  %s3277_s7 = sld [smem:[#allocation14_spill]] }
  0x17   : > { %p2531_p13 = pneg %p2818_p11 }
  0x1b   : > { %s2529_s26 = scalar_lea.hbm %s3277_s7, 16 }
  0x1c   : > { %p2530_p12 = scmp.ne.s32.totalorder %s3277_s7, %s2529_s26  ;;  %p2536_p5 = scmp.lt.u32.totalorder %s2529_s26, %s3277_s7 }
  0x1e   : > { %p2532_p0 = pnand %p2531_p13, %p2530_p12 }
  0x20   : > { %p2533_p3 = pneg %p2532_p0 }
  0x22   : > { %p2538_p7 = pnand %p2536_p5, %p2533_p3 }
  0x24   : > { %2541 = shalt.err (!%p2538_p7)
}
  0x25   : > { %s2542_s18 = scalar_lea.vmem %s351_s13, 16  ;;  %s2549_s28 = scalar_lea.vmem %s351_s13, 32 }
  0x26   : > { %p2543_p10 = scmp.ne.s32.totalorder %s351_s13, %s2542_s18  ;;  %p2550_p2 = scmp.lt.s32.totalorder %s351_s13, %s351_s13 }
  0x27   : > { %p2551_p6 = scmp.lt.s32.totalorder %s2549_s28, %s2542_s18 }
  0x28   : > { %p2545_p9 = pnand %p2543_p10, %p2531_p13 }
  0x29   : > { %p2552_p4 = por %p2551_p6, %p2550_p2 }
  0x2a   : > { %p2546_p1 = pneg %p2545_p9 }
  0x2c   : > { %p2553_p8 = pnand %p2552_p4, %p2546_p1 }
  0x2e   : > { %2556 = shalt.err (!%p2553_p8)
}
  0x2f   : > { %2444 = dma.hbm_to_vmem [thread:$0]  (!%p2818_p11), %s3277_s7, 16, %s351_s13, [#allocation6]  }
  0x30   : > { %s2557_s30 = scalar_lea.hbm %s3259_s9, 16 }
  0x31   : > { %p2558_p9 = scmp.ne.s32.totalorder %s3259_s9, %s2557_s30  ;;  %p2564_p4 = scmp.lt.u32.totalorder %s2557_s30, %s3259_s9 }
  0x33   : > { %p2560_p2 = pnand %p2558_p9, %p2531_p13 }
  0x35   : > { %p2561_p1 = pneg %p2560_p2 }
  0x37   : > { %p2566_p6 = pnand %p2564_p4, %p2561_p1 }
  0x39   : > { %2569 = shalt.err (!%p2566_p6)
}
  0x3a   : > { %s2570_s13 = scalar_lea.vmem %s2822_s15, 16  ;;  %s2577_s12 = scalar_lea.vmem %s2822_s15, 32 }
  0x3b   : > { %p2571_p8 = scmp.ne.s32.totalorder %s2822_s15, %s2570_s13  ;;  %p2578_p3 = scmp.lt.s32.totalorder %s2822_s15, %s2822_s15 }
  0x3c   : > { %p2579_p5 = scmp.lt.s32.totalorder %s2577_s12, %s2570_s13 }
  0x3d   : > { %p2573_p12 = pnand %p2571_p8, %p2531_p13 }
  0x3e   : > { %p2580_p7 = por %p2579_p5, %p2578_p3 }
  0x3f   : > { %p2574_p0 = pneg %p2573_p12 }
  0x41   : > { %p2581_p10 = pnand %p2580_p7, %p2574_p0 }
  0x43   : > { %2584 = shalt.err (!%p2581_p10)
}
  0x44   : > { %2447 = dma.hbm_to_vmem [thread:$0]  (!%p2818_p11), %s3259_s9, 16, %s2822_s15, [#allocation6]  }
  0x45   : > { %s3278_s20 = ssub.s32 %s2685_s24, %s2825_s17  ;;  %s36_s26 = sadd.s32 1, %s2681_s23 }
  0x46   : > { %p34_p13 = scmp.eq.s32.totalorder %s3278_s20, 0  ;;  %p43_p9 = scmp.ne.s32.totalorder %s2681_s23, %s2677_s22 }
  0x47   : > { %p44_p2 = scmp.eq.s32.totalorder %s2685_s24, 0  ;;  %p3279_p4 = scmp.eq.s32.totalorder %s2790_s25, 1 }
  0x48   : > { %s2885_s16 = scalar_select %p34_p13, %s2681_s23, %s36_s26  }
  0x49   : > { %p45_p1 = por %p44_p2, %p43_p9  ;;  %p2889_p6 = por %p3279_p4, %p43_p9 }
  0x4a   : > { %p2458_p8 = scmp.lt.s32.totalorder %s2685_s24, 2  ;;  %s381_s14 = sand.u32 1, %s2681_s23  }
  0x4b   : > { %s2225_s18 = sshll.u32 %s381_s14, 3  ;;  %s2226_s28 = sshll.u32 %s2685_s24, 7 }
  0x4c   : > { %s2899_s15 = scalar_lea.hbm %s3250_s0, %s2226_s28  ;;  %s385_s19 = scalar_lea.vmem [#allocation2], %s2225_s18 }
  0x4d   : > { %s392_s21 = sshll.u32 %s385_s19, 4  ;;  %p2903_p11 = pnand %p2458_p8, %p45_p1  ;;  %s2901_s21 = int_to_ptr.vmem [resolvable:$true] %s392_s21 }
  0x4e   : > { %s382_s26 = scalar_lea.sflag [#allocation3], %s381_s14  ;;  %s2585_s7 = scalar_lea.hbm %s2899_s15, 128 }
  0x4f   : > { %p2586_p12 = scmp.ne.s32.totalorder %s2899_s15, %s2585_s7  ;;  %p2587_p0 = pneg %p2903_p11 }
  0x50   : > { %s2590_s13 = scalar_lea.hbm %s3250_s0, 256  ;;  %p2591_p7 = scmp.lt.u32.totalorder %s2899_s15, %s3250_s0 }
  0x51   : > { %p2588_p3 = pnand %p2587_p0, %p2586_p12  ;;  %p2592_p10 = scmp.lt.u32.totalorder %s2590_s13, %s2585_s7 }
  0x52   : > { %p2594_p9 = scmp.lt.u32.totalorder %s2585_s7, %s2899_s15 }
  0x53   : > { %p2589_p5 = pneg %p2588_p3  ;;  %p2593_p13 = por %p2592_p10, %p2591_p7 }
  0x55   : > { %p2595_p2 = por %p2594_p9, %p2593_p13 }
  0x57   : > { %p2596_p1 = pnand %p2595_p2, %p2589_p5 }
  0x59   : > { %2599 = shalt.err (!%p2596_p1)
}
  0x5a   : > { %s2600_s14 = scalar_lea.vmem %s2901_s21, 128  ;;  %s2689_s28 = smov [#allocation2]  }
  0x5b   : > { %p2601_p4 = scmp.ne.s32.totalorder %s2901_s21, %s2600_s14  ;;  %s2605_s18 = sshll.u32 %s2689_s28, 4  ;;  %s2606_s18 = int_to_ptr.vmem [resolvable:$false] %s2605_s18 }
  0x5c   : > { %s2607_s12 = scalar_lea.vmem %s2606_s18, 256  ;;  %p2608_p3 = scmp.lt.s32.totalorder %s2901_s21, %s2606_s18 }
  0x5d   : > { %p2603_p8 = pnand %p2601_p4, %p2587_p0  ;;  %p2609_p7 = scmp.lt.s32.totalorder %s2607_s12, %s2600_s14 }
  0x5f   : > { %p2604_p12 = pneg %p2603_p8  ;;  %p2610_p10 = por %p2609_p7, %p2608_p3 }
  0x61   : > { %p2611_p13 = pnand %p2610_p10, %p2604_p12 }
  0x63   : > { %2614 = shalt.err (!%p2611_p13)
}
  0x64   : > { %2451 = dma.hbm_to_vmem [thread:$0]  (!%p2903_p11), %s2899_s15, 128, %s2901_s21, %s382_s26  }
  0x65   : > { %p3282_p5 = scmp.ne.s32.totalorder %s3275_s29, 0 }
  0x66   : > { %s2935_s7 = sand.u32 (!%p3282_p5), 1, %s2677_s22   ;;  %p3283_p0 = scmp.ne.s32.totalorder (!%p3282_p5), %s3272_s27, 0 }
  0x67   : > { %407 = sbr.rel (%p3282_p5) target bundleno = 2620 (0xa3c), region = 68  ;;  %s2228_s13 = sshll.u32 (!%p3282_p5), %s2935_s7, 3 }
  0x68   : > { %s410_s19 = scalar_lea.sflag (!%p3282_p5), [#allocation3], %s2935_s7  ;;  %s413_s14 = scalar_lea.vmem (!%p3282_p5), [#allocation2], %s2228_s13 }
  0x6e   : > { %2660 = dma.done.wait (%p3283_p0), %s410_s19, 128  }
  0x6f   : > { %2662 = vsyncadd (%p3283_p0), %s410_s19, 4294967168  ;;  %p3284_p11 = scmp.eq.s32.totalorder %s2790_s25, 0 }
  0x71   : > { %2664 = dma.done.wait (%p3284_p11), [#allocation6], 32   ;;  %p3285_p9 = pmov %p3284_p11 }
  0x72   : > { %vm472_vm0 = vcmask 261120   ;;  %v2949_v0 = vld [vmem:[%s413_s14] sm:$0xff]  ;;  %v503_v9 = vld [vmem:[%s3254_s4 + $0x10] sm:$0xff]  ;;  %v2690_v10 = vmov 0.0|0.0   ;;  %v504_v12 = vld [vmem:[%s3254_s4 + $0x18] sm:$0xff]  ;;  %vm2691_vm1 = vmmov 0   ;;  %v600_v33 = vlaneseq }
  0x73   : > { %2666 = vsyncadd (%p3285_p9), [#allocation6], 4294967264  ;;  %v473_v1 = vsel %vm472_vm0, %v2949_v0, 0.0  ;;  %v501_v7 = vld [vmem:[%s3254_s4] sm:$0xff]  ;;  %v502_v8 = vld [vmem:[%s3254_s4 + $0x8] sm:$0xff]  ;;  %2399 = vmatprep.subr.bf16.mxu1 %v2690_v10  ;;  %v2692_v13 = vmov 0.0   ;;  %v2403_v14 = vpack.c.bf16 %v504_v12, %v503_v9 }
  0x74   : > { %474 = vadd.xlane.f32.xlu0 %v473_v1  ;;  %v2400_v11 = vpack.c.bf16 %v502_v8, %v501_v7  ;;  %2315 = vmatprep.mubr.msk.f32.mxu1 %vm2691_vm1, %v2692_v13  ;;  %v2978_v19 = vld [vmem:[%s3252_s2] ss:$0 sm:$0xff]  ;;  %s2693_s21 = smov 104   ;;  %s2694_s20 = smov 120   ;;  %v2698_v31 = vmov 1983009808  }
  0x75   : > { %2328 = vmatprep.subr.mxu0 %v2692_v13  ;;  %2330 = vmatprep.mubr.msk.f32.mxu0 %vm2691_vm1, %v2692_v13  ;;  %v2983_v21 = vld [vmem:[%s3253_s3] ss:$0 sm:$0xff]  ;;  %s2695_s26 = smov 112   ;;  %s2696_s28 = smov 96   ;;  %v598_v32 = vunpack.c.l.s4 %v2698_v31  ;;  %v601_v35 = vshrl.u32 %v600_v33, 7  ;;  %vm1027_vm2 = vcmask 64512  }
  0x76   : > { %2401 = vmatpush3.bf16.msra.mxu1 %v2400_v11  ;;  %v2234_v24 = vld [vmem:[%s3255_s5] ss:$0 sm:$0xff]  ;;  %s2697_s18 = smov 64   ;;  %v2699_v36 = vmov 1934713408   ;;  %p465_p2 = scmp.lt.s32.totalorder %s2790_s25, 1 }
  0x77   : > { %2402 = vmatprep.subr.bf16.mxu1 %v2690_v10  ;;  %v599_v34 = vunpack.c.0.s8 %v598_v32  ;;  %v630_v37 = vunpack.c.l.s4 %v2699_v36  ;;  %s2700_s19 = smov 16   ;;  %s2701_s14 = smov 8   ;;  %vm1827_vm3 = vcmask 130048   ;;  %vm1829_vm4 = vcmask 195584  }
  0x78   : > { %s466_s12 = scalar_select %p465_p2, %s2790_s25, 1  ;;  %vm2032_vm5 = vcmask 523264  }
  0x79   : > { %v3005_v41 = vsub.s32 %v599_v34, %v601_v35  ;;  %v631_v44 = vunpack.c.0.s8 %v630_v37  ;;  %s2109_s29 = scalar_lea.sflag [#allocation4], %s2935_s7 }
  0x7a   : > { %2404 = vmatpush3.bf16.msra.mxu1 %v2403_v14  ;;  %s467_s27 = scalar_lea.vmem %s3251_s1, %s466_s12 }
  0x7b   : > { %2318 = vmatprep.subr.mxu1 %v2692_v13  ;;  %v3015_v50 = vsub.s32 %v631_v44, %v601_v35 }
 0x101   : > { %v475_v2 = vpop.xlane.xlu0 %474 }
 0x102   : > { %v477_v3 = vmul.f32 0.03125, %v475_v2 }
 0x104   : > { %v478_v4 = vsub.f32 %v2949_v0, %v477_v3 }
 0x106   : > { %v479_v5 = vmul.f32 %v478_v4, %v478_v4 }
 0x108   : > { %v480_v6 = vsel %vm472_vm0, %v479_v5, 0.0 }
 0x109   : > { %481 = vadd.xlane.f32.xlu0 %v480_v6 }
 0x196   : > { %v482_v15 = vpop.xlane.xlu0 %481 }
 0x197   : > { %v483_v16 = vmul.f32 0.03125, %v482_v15 }
 0x199   : > { %v484_v17 = vadd.f32 1e-06, %v483_v16 }
 0x19b   : > { %2509 = vrsqrt.f32 %v484_v17 }
 0x1a5   : > { %v2510_v18 = vpop.eup %2509 }
 0x1a6   : > { %v486_v20 = vmul.f32 %v2510_v18, %v478_v4 }
 0x1a8   : > { %v493_v22 = vmul.f32 %v2978_v19, %v486_v20 }
 0x1aa   : > { %v500_v23 = vadd.f32 %v2983_v21, %v493_v22 }
 0x1ac   : > { %2316 = vmatmul.mubr.msk.f32.vlgmr.msra.gmra.mrb[0].mxu1 %vm472_vm0, %v500_v23 }
 0x1ad   : > { %2320 = vmatprep.mubr.msk.f32.mxu1 %vm2691_vm1, %v2692_v13 }
 0x27f   : > { %v581_v25 = vpop.f32.mrb[0].mxu1 }
 0x280   : > { %v582_v26 = vadd.f32 %v2234_v24, %v581_v25  ;;  %v2317_v27 = vpop.f32.mrb[1].mxu1 }
 0x282   : > { %592 = vrot.lane.b32.xlu0 %v582_v26, %s2693_s21  ;;  %586 = vrot.lane.b32.xlu1 %v582_v26, %s2694_s20 }
 0x286   : > { %589 = vrot.lane.b32.xlu1 %v582_v26, %s2695_s26  ;;  %s2264_s26 = sshll.u32 %s2790_s25, 7 }
 0x28a   : > { %731 = vrot.lane.b32.xlu1 %v582_v26, %s2696_s28 }
 0x2f4   : > { %v2993_v28 = vpop.permute.xlu1 %586  ;;  %v2999_v30 = vpop.permute.xlu0 %592 }
 0x2f5   : > { %733 = vrot.lane.b32.xlu1 %v2993_v28, %s2696_s28  ;;  %v611_v42 = vcombine.low %v2993_v28, %v2999_v30  ;;  %v612_v43 = vcombine.high %v2993_v28, %v2999_v30 }
 0x2f7   : > { %v619_v48 = vrot.slane %v611_v42, %v3005_v41  ;;  %v626_v49 = vrot.slane %v612_v43, %v3005_v41 }
 0x2f8   : > { %v2996_v29 = vpop.permute.xlu1 %589 }
 0x2f9   : > { %735 = vrot.lane.b32.xlu1 %v2996_v29, %s2696_s28  ;;  %v595_v38 = vcombine.low %v582_v26, %v2996_v29  ;;  %v596_v39 = vcombine.high %v582_v26, %v2996_v29 }
 0x2fb   : > { %v603_v45 = vrot.slane %v595_v38, %v3005_v41  ;;  %v610_v46 = vrot.slane %v596_v39, %v3005_v41 }
 0x2fc   : > { %v732_v40 = vpop.permute.xlu1 %731 }
 0x2fd   : > { %737 = vrot.lane.b32.xlu1 %v2999_v30, %s2696_s28  ;;  %v627_v51 = vcombine.low %v603_v45, %v619_v48  ;;  %v628_v52 = vcombine.high %v603_v45, %v619_v48  ;;  %v643_v53 = vcombine.low %v610_v46, %v626_v49  ;;  %v644_v54 = vcombine.high %v610_v46, %v626_v49  ;;  %s464_s28 = scalar_lea.vmem [#allocation8], %s2228_s13  ;;  %s2703_s13 = smov [#allocation8]  }
 0x2fe   : > { %s2619_s15 = sshll.u32 %s2703_s13, 4  ;;  %s2620_s15 = int_to_ptr.vmem [resolvable:$false] %s2619_s15 }
 0x2ff   : > { %v635_v58 = vrot.slane %v627_v51, %v3015_v50  ;;  %v642_v59 = vrot.slane %v628_v52, %v3015_v50  ;;  %v651_v60 = vrot.slane %v643_v53, %v3015_v50  ;;  %v658_v61 = vrot.slane %v644_v54, %v3015_v50  ;;  %s2621_s21 = scalar_lea.vmem %s2620_s15, 256 }
 0x301   : > { %879 = vrot.lane.b32.xlu1 %v582_v26, %s2697_s18  ;;  %v663_v6 = vcombine.low %v635_v58, %v642_v59  ;;  %v2236_v7 = vcombine.high %v635_v58, %v642_v59  ;;  %v679_v8 = vcombine.low %v651_v60, %v658_v61  ;;  %v2237_v9 = vcombine.high %v651_v60, %v658_v61 }
 0x303   : > { %v670_v22 = vrot.slane %v663_v6, %v3005_v41  ;;  %v678_v23 = vrot.slane %v2236_v7, %v3005_v41  ;;  %v686_v24 = vrot.slane %v679_v8, %v3005_v41  ;;  %v694_v25 = vrot.slane %v2237_v9, %v3005_v41 }
 0x305   : > { %v695_v37 = vcombine.low %v670_v22, %v678_v23  ;;  %v711_v38 = vcombine.low %v686_v24, %v694_v25  ;;  %v696_v39 = vcombine.high %v670_v22, %v678_v23 }
 0x307   : > { %v703_v51 = vrot.slane %v695_v37, %v3015_v50  ;;  %v719_v52 = vrot.slane %v711_v38, %v3015_v50  ;;  %v710_v53 = vrot.slane %v696_v39, %v3015_v50 }
 0x309   : > { %v728_v60 = vcombine.high %v703_v51, %v719_v52 }
 0x367   : > { %v734_v47 = vpop.permute.xlu1 %733 }
 0x36b   : > { %v736_v55 = vpop.permute.xlu1 %735 }
 0x36c   : > { %v743_v56 = vcombine.low %v732_v40, %v736_v55  ;;  %v744_v57 = vcombine.high %v732_v40, %v736_v55  ;;  %v712_v40 = vcombine.high %v686_v24, %v694_v25 }
 0x36e   : > { %v751_v2 = vrot.slane %v743_v56, %v3005_v41  ;;  %v758_v3 = vrot.slane %v744_v57, %v3005_v41  ;;  %v726_v54 = vrot.slane %v712_v40, %v3015_v50  ;;  %v727_v57 = vcombine.low %v703_v51, %v719_v52 }
 0x36f   : > { %v738_v62 = vpop.permute.xlu1 %737 }
 0x370   : > { %v759_v63 = vcombine.low %v734_v47, %v738_v62  ;;  %v760_v1 = vcombine.high %v734_v47, %v738_v62  ;;  %v729_v58 = vcombine.low %v710_v53, %v726_v54  ;;  %v730_v62 = vcombine.high %v710_v53, %v726_v54 }
 0x372   : > { %v767_v4 = vrot.slane %v759_v63, %v3005_v41  ;;  %v774_v5 = vrot.slane %v760_v1, %v3005_v41  ;;  %v2250_v63 = vld [vmem:[%s467_s27] ss:$0 sm:$0xff]  ;;  %s2702_s27 = smov 24  }
 0x374   : > { %v775_v11 = vcombine.low %v751_v2, %v767_v4  ;;  %v776_v12 = vcombine.high %v751_v2, %v767_v4  ;;  %v791_v14 = vcombine.low %v758_v3, %v774_v5  ;;  %v792_v15 = vcombine.high %v758_v3, %v774_v5 }
 0x376   : > { %v783_v16 = vrot.slane %v775_v11, %v3015_v50  ;;  %v790_v17 = vrot.slane %v776_v12, %v3015_v50  ;;  %v799_v18 = vrot.slane %v791_v14, %v3015_v50  ;;  %v806_v20 = vrot.slane %v792_v15, %v3015_v50 }
 0x378   : > { %v811_v26 = vcombine.low %v783_v16, %v790_v17  ;;  %v2238_v27 = vcombine.high %v783_v16, %v790_v17  ;;  %v827_v31 = vcombine.low %v799_v18, %v806_v20  ;;  %v2239_v32 = vcombine.high %v799_v18, %v806_v20  ;;  %v880_v20 = vpop.permute.xlu1 %879 }
 0x37a   : > { %v818_v33 = vrot.slane %v811_v26, %v3005_v41  ;;  %v826_v34 = vrot.slane %v2238_v27, %v3005_v41  ;;  %v834_v35 = vrot.slane %v827_v31, %v3005_v41  ;;  %v842_v36 = vrot.slane %v2239_v32, %v3005_v41 }
 0x37c   : > { %v843_v42 = vcombine.low %v818_v33, %v826_v34  ;;  %v859_v43 = vcombine.low %v834_v35, %v842_v36  ;;  %v844_v44 = vcombine.high %v818_v33, %v826_v34  ;;  %v860_v45 = vcombine.high %v834_v35, %v842_v36 }
 0x37e   : > { %v851_v46 = vrot.slane %v843_v42, %v3015_v50  ;;  %v867_v47 = vrot.slane %v859_v43, %v3015_v50  ;;  %v858_v48 = vrot.slane %v844_v44, %v3015_v50  ;;  %v874_v49 = vrot.slane %v860_v45, %v3015_v50 }
 0x380   : > { %v875_v55 = vcombine.low %v851_v46, %v867_v47  ;;  %v877_v56 = vcombine.low %v858_v48, %v874_v49  ;;  %v876_v59 = vcombine.high %v851_v46, %v867_v47  ;;  %v878_v61 = vcombine.high %v858_v48, %v874_v49 }
 0x382   : > { %2319 = vmatpush3.xpose.msk.msra.mxu1 %vm1027_vm2, %v875_v55  ;;  %2329 = vmatpush3.xpose.msk.msra.mxu0 %vm1027_vm2, %v877_v56 }
 0x383   : > { %2323 = vmatprep.subr.mxu1 %v2692_v13  ;;  %2338 = vmatprep.subr.mxu0 %v2692_v13 }
 0x385   : > { %2321 = vmatmul.mubr.msk.f32.vlgmr.msra.gmra.mrb[2].mxu1 %vm1027_vm2, %v727_v57  ;;  %2331 = vmatmul.mubr.msk.f32.vlgmr.msra.gmra.mrb[0].mxu0 %vm1027_vm2, %v729_v58 }
 0x386   : > { %2324 = vmatpush3.xpose.msk.msra.mxu1 %vm1027_vm2, %v876_v59  ;;  %2325 = vmatprep.mubr.msk.f32.mxu1 %vm2691_vm1, %v2692_v13 }
 0x387   : > { %2333 = vmatprep.subr.mxu1 %v2692_v13  ;;  %2340 = vmatprep.mubr.msk.f32.mxu0 %vm2691_vm1, %v2692_v13 }
 0x389   : > { %2326 = vmatmul.mubr.msk.f32.vlgmr.msra.gmra.mrb[4].mxu1 %vm1027_vm2, %v728_v60 }
 0x38a   : > { %2334 = vmatpush3.xpose.msk.msra.mxu1 %vm1027_vm2, %v878_v61  ;;  %2335 = vmatprep.mubr.msk.f32.mxu1 %vm2691_vm1, %v2692_v13 }
 0x38b   : > { %2343 = vmatprep.subr.mxu1 %v2692_v13 }
 0x38d   : > { %2336 = vmatmul.mubr.msk.f32.vlgmr.msra.gmra.mrb[6].mxu1 %vm1027_vm2, %v730_v62 }
 0x38e   : > { %2345 = vmatprep.mubr.msk.f32.mxu1 %vm2691_vm1, %v2692_v13 }
 0x458   : > { %v1100_v1 = vpop.f32.mrb[2].mxu1  ;;  %v1252_v2 = vpop.f32.mrb[0].mxu0 }
 0x459   : > { %v1338_v3 = vadd.f32 %v2250_v63, %v1100_v1  ;;  %v2322_v4 = vpop.f32.mrb[3].mxu1  ;;  %v2332_v5 = vpop.f32.mrb[1].mxu0  ;;  %v1340_v6 = vadd.f32 %v2250_v63, %v1252_v2 }
 0x45b   : > { %v1342_v7 = vsel %vm1027_vm2, %v1338_v3, -inf  ;;  %v1348_v12 = vsel %vm1027_vm2, %v1340_v6, -inf }
 0x45c   : > { %1343 = vmax.xlane.f32.xlu1 %v1342_v7  ;;  %v1176_v8 = vpop.f32.mrb[4].mxu1 }
 0x45d   : > { %v1339_v9 = vadd.f32 %v2250_v63, %v1176_v8  ;;  %v2327_v11 = vpop.f32.mrb[5].mxu1 }
 0x45f   : > { %v1345_v14 = vsel %vm1027_vm2, %v1339_v9, -inf }
 0x460   : > { %1349 = vmax.xlane.f32.xlu1 %v1348_v12  ;;  %1346 = vmax.xlane.f32.xlu0 %v1345_v14  ;;  %v1328_v15 = vpop.f32.mrb[6].mxu1 }
 0x461   : > { %v1341_v16 = vadd.f32 %v2250_v63, %v1328_v15  ;;  %v2337_v17 = vpop.f32.mrb[7].mxu1 }
 0x463   : > { %v1351_v18 = vsel %vm1027_vm2, %v1341_v16, -inf }
 0x464   : > { %1352 = vmax.xlane.f32.xlu0 %v1351_v18 }
 0x471   : > { %883 = vrot.lane.b32.xlu1 %v2996_v29, %s2697_s18 }
 0x475   : > { %885 = vrot.lane.b32.xlu1 %v2999_v30, %s2697_s18 }
 0x47a   : > { %881 = vrot.lane.b32.xlu0 %v2993_v28, %s2697_s18  ;;  %s2122_s18 = sshll.u32 %s464_s28, 4  ;;  %s3207_s18 = int_to_ptr.vmem [resolvable:$true] %s2122_s18 }
 0x47b   : > { %s2615_s25 = scalar_lea.vmem %s3207_s18, 128  ;;  %p2622_p12 = scmp.lt.s32.totalorder %s3207_s18, %s2620_s15 }
 0x47c   : > { %p2616_p1 = scmp.ne.s32.totalorder %s3207_s18, %s2615_s25  ;;  %p2623_p3 = scmp.lt.s32.totalorder %s2621_s21, %s2615_s25 }
 0x47e   : > { %p2617_p4 = pnand %p2616_p1, %p2889_p6  ;;  %p2624_p7 = por %p2623_p3, %p2622_p12 }
 0x480   : > { %p2618_p8 = pneg %p2617_p4 }
 0x482   : > { %p2625_p10 = pnand %p2624_p7, %p2618_p8 }
 0x4e9   : > { %v1344_v22 = vpop.xlane.xlu1 %1343 }
 0x4ea   : > { %v1354_v23 = vsub.f32 %v1338_v3, %v1344_v22 }
 0x4ec   : > { %v1358_v24 = vmul.f32 1.442695, %v1354_v23 }
 0x4ed   : > { %v1350_v25 = vpop.xlane.xlu1 %1349  ;;  %v1347_v26 = vpop.xlane.xlu0 %1346 }
 0x4ee   : > { %2511 = vpow2.f32 %v1358_v24  ;;  %v1356_v27 = vsub.f32 %v1340_v6, %v1350_v25  ;;  %v1355_v31 = vsub.f32 %v1339_v9, %v1347_v26  ;;  %v1831_v24 = vld [vmem:[%s3256_s6] sm:$0xff]  ;;  %v1832_v25 = vld [vmem:[%s3256_s6 + $0x8] sm:$0xff] }
 0x4ef   : > { %v2406_v26 = vpack.c.bf16 %v1832_v25, %v1831_v24 }
 0x4f0   : > { %v1362_v32 = vmul.f32 1.442695, %v1356_v27  ;;  %v1360_v33 = vmul.f32 1.442695, %v1355_v31 }
 0x4f1   : > { %v884_v34 = vpop.permute.xlu1 %883  ;;  %v1353_v35 = vpop.xlane.xlu0 %1352 }
 0x4f2   : > { %2513 = vpow2.f32 %v1362_v32  ;;  %v1357_v29 = vsub.f32 %v1341_v16, %v1353_v35  ;;  %v891_v30 = vcombine.low %v880_v20, %v884_v34  ;;  %v892_v36 = vcombine.high %v880_v20, %v884_v34 }
 0x4f3   : > { %2515 = vpow2.f32 %v1360_v33 }
 0x4f4   : > { %v1364_v37 = vmul.f32 1.442695, %v1357_v29  ;;  %v899_v43 = vrot.slane %v891_v30, %v3005_v41  ;;  %v906_v44 = vrot.slane %v892_v36, %v3005_v41 }
 0x4f5   : > { %v886_v28 = vpop.permute.xlu1 %885  ;;  %v882_v38 = vpop.permute.xlu0 %881 }
 0x4f6   : > { %2517 = vpow2.f32 %v1364_v37  ;;  %v907_v39 = vcombine.low %v882_v38, %v886_v28  ;;  %v908_v40 = vcombine.high %v882_v38, %v886_v28 }
 0x4f8   : > { %v2512_v42 = vpop.eup %2511  ;;  %v915_v45 = vrot.slane %v907_v39, %v3005_v41  ;;  %v922_v46 = vrot.slane %v908_v40, %v3005_v41 }
 0x4f9   : > { %v1366_v47 = vsel %vm1027_vm2, %v2512_v42, 0.0 }
 0x4fa   : > { %v923_v48 = vcombine.low %v899_v43, %v915_v45  ;;  %v924_v49 = vcombine.high %v899_v43, %v915_v45  ;;  %v939_v51 = vcombine.low %v906_v44, %v922_v46  ;;  %v940_v52 = vcombine.high %v906_v44, %v922_v46  ;;  %1367 = vadd.xlane.f32.xlu0 %v1366_v47 }
 0x4fc   : > { %v2514_v53 = vpop.eup %2513  ;;  %v931_v54 = vrot.slane %v923_v48, %v3015_v50  ;;  %v938_v55 = vrot.slane %v924_v49, %v3015_v50  ;;  %v947_v56 = vrot.slane %v939_v51, %v3015_v50  ;;  %v954_v57 = vrot.slane %v940_v52, %v3015_v50 }
 0x4fd   : > { %v2516_v58 = vpop.eup %2515  ;;  %v1372_v59 = vsel %vm1027_vm2, %v2514_v53, 0.0 }
 0x4fe   : > { %v959_v60 = vcombine.low %v931_v54, %v938_v55  ;;  %v2240_v61 = vcombine.high %v931_v54, %v938_v55  ;;  %v975_v62 = vcombine.low %v947_v56, %v954_v57  ;;  %v2241_v63 = vcombine.high %v947_v56, %v954_v57  ;;  %1373 = vadd.xlane.f32.xlu0 %v1372_v59 }
 0x4ff   : > { %v1369_v1 = vsel %vm1027_vm2, %v2516_v58, 0.0 }
 0x500   : > { %v2518_v2 = vpop.eup %2517  ;;  %v966_v3 = vrot.slane %v959_v60, %v3005_v41  ;;  %v974_v4 = vrot.slane %v2240_v61, %v3005_v41  ;;  %v982_v5 = vrot.slane %v975_v62, %v3005_v41  ;;  %v990_v6 = vrot.slane %v2241_v63, %v3005_v41  ;;  %1370 = vadd.xlane.f32.xlu1 %v1369_v1  ;;  %v1833_v61 = vld [vmem:[%s3256_s6 + $0x10] sm:$0xff]  ;;  %v1834_v62 = vld [vmem:[%s3256_s6 + $0x18] sm:$0xff] }
 0x501   : > { %v1375_v7 = vsel %vm1027_vm2, %v2518_v2, 0.0 }
 0x502   : > { %1376 = vadd.xlane.f32.xlu0 %v1375_v7  ;;  %v991_v8 = vcombine.low %v966_v3, %v974_v4  ;;  %v1007_v9 = vcombine.low %v982_v5, %v990_v6  ;;  %v992_v11 = vcombine.high %v966_v3, %v974_v4  ;;  %v1008_v12 = vcombine.high %v982_v5, %v990_v6 }
 0x503   : > { %v2409_v4 = vpack.c.bf16 %v1834_v62, %v1833_v61 }
 0x504   : > { %v999_v14 = vrot.slane %v991_v8, %v3015_v50  ;;  %v1015_v15 = vrot.slane %v1007_v9, %v3015_v50  ;;  %v1006_v16 = vrot.slane %v992_v11, %v3015_v50  ;;  %v1022_v17 = vrot.slane %v1008_v12, %v3015_v50 }
 0x506   : > { %v1023_v18 = vcombine.low %v999_v14, %v1015_v15  ;;  %v1024_v20 = vcombine.high %v999_v14, %v1015_v15  ;;  %v1025_v22 = vcombine.low %v1006_v16, %v1022_v17  ;;  %v1026_v23 = vcombine.high %v1006_v16, %v1022_v17 }
 0x508   : > { %2339 = vmatpush3.msra.mxu0 %v1023_v18  ;;  %2344 = vmatpush3.msra.mxu1 %v1024_v20 }
 0x509   : > { %2341 = vmatmul.mubr.msk.f32.vlgmr.msra.gmra.mrb[2].mxu0 %vm1027_vm2, %v2512_v42  ;;  %2346 = vmatmul.mubr.msk.f32.vlgmr.msra.gmra.mrb[8].mxu1 %vm1027_vm2, %v2516_v58 }
 0x50a   : > { %2348 = vmatprep.subr.mxu0 %v2692_v13  ;;  %2353 = vmatprep.subr.mxu1 %v2692_v13 }
 0x50b   : > { %2349 = vmatpush3.msra.mxu0 %v1025_v22  ;;  %2354 = vmatpush3.msra.mxu1 %v1026_v23 }
 0x50c   : > { %2350 = vmatprep.mubr.msk.f32.mxu0 %vm2691_vm1, %v2692_v13  ;;  %2355 = vmatprep.mubr.msk.f32.mxu1 %vm2691_vm1, %v2692_v13 }
 0x50d   : > { %2351 = vmatmul.mubr.msk.f32.vlgmr.msra.gmra.mrb[4].mxu0 %vm1027_vm2, %v2514_v53  ;;  %2356 = vmatmul.mubr.msk.f32.vlgmr.msra.gmra.mrb[10].mxu1 %vm1027_vm2, %v2518_v2 }
 0x50e   : > { %2405 = vmatprep.subr.bf16.mxu0 %v2690_v10  ;;  %2366 = vmatprep.mubr.msk.f32.mxu0 %vm2691_vm1, %v2692_v13 }
 0x50f   : > { %2411 = vmatprep.subr.bf16.mxu1 %v2690_v10  ;;  %2377 = vmatprep.mubr.msk.f32.mxu1 %vm2691_vm1, %v2692_v13 }
 0x510   : > { %2407 = vmatpush3.bf16.msra.mxu0 %v2406_v26 }
 0x511   : > { %2408 = vmatprep.subr.bf16.mxu0 %v2690_v10 }
 0x514   : > { %2410 = vmatpush3.bf16.msra.mxu0 %v2409_v4 }
 0x515   : > { %2417 = vmatprep.subr.bf16.mxu0 %v2690_v10 }
 0x587   : > { %v1368_v27 = vpop.xlane.xlu0 %1367 }
 0x588   : > { %2519 = vrcp.f32 %v1368_v27 }
 0x58b   : > { %v1374_v31 = vpop.xlane.xlu0 %1373 }
 0x58c   : > { %2521 = vrcp.f32 %v1374_v31 }
 0x58d   : > { %v1371_v32 = vpop.xlane.xlu1 %1370 }
 0x58e   : > { %2523 = vrcp.f32 %v1371_v32 }
 0x58f   : > { %v1377_v33 = vpop.xlane.xlu0 %1376 }
 0x590   : > { %2525 = vrcp.f32 %v1377_v33 }
 0x592   : > { %v2520_v29 = vpop.eup %2519 }
 0x596   : > { %v2522_v37 = vpop.eup %2521 }
 0x598   : > { %v2524_v28 = vpop.eup %2523 }
 0x59a   : > { %v2526_v38 = vpop.eup %2525 }
 0x5dc   : > { %v1451_v34 = vpop.f32.mrb[2].mxu0  ;;  %v1524_v35 = vpop.f32.mrb[8].mxu1 }
 0x5dd   : > { %v2342_v30 = vpop.f32.mrb[3].mxu0  ;;  %v2347_v36 = vpop.f32.mrb[9].mxu1  ;;  %v1674_v42 = vmul.f32 %v2520_v29, %v1451_v34  ;;  %v1675_v43 = vmul.f32 %v2524_v28, %v1524_v35 }
 0x5de   : > { %v2258_v30 = vld [vmem:[#allocation5] ss:$0 sm:$0xff] }
 0x5e0   : > { %v1597_v39 = vpop.f32.mrb[4].mxu0  ;;  %v1670_v40 = vpop.f32.mrb[10].mxu1 }
 0x5e1   : > { %v1676_v44 = vmul.f32 %v2522_v37, %v1597_v39  ;;  %v1677_v45 = vmul.f32 %v2526_v38, %v1670_v40  ;;  %v2352_v46 = vpop.f32.mrb[5].mxu0  ;;  %v2357_v47 = vpop.f32.mrb[11].mxu1 }
 0x5e2   : > { %v1934_v46 = vld [vmem:[%s3258_s8 + $0x10] sm:$0xff]  ;;  %v1935_v47 = vld [vmem:[%s3258_s8 + $0x18] sm:$0xff] }
 0x5e3   : > { %v1678_v48 = vcombine.low %v1674_v42, %v1676_v44  ;;  %v1679_v49 = vcombine.high %v1674_v42, %v1676_v44  ;;  %v1694_v51 = vcombine.low %v1675_v43, %v1677_v45  ;;  %v1695_v52 = vcombine.high %v1675_v43, %v1677_v45 }
 0x5e5   : > { %v1686_v53 = vrot.slane %v1678_v48, %v3005_v41  ;;  %v1693_v54 = vrot.slane %v1679_v49, %v3005_v41  ;;  %v1702_v55 = vrot.slane %v1694_v51, %v3005_v41  ;;  %v1709_v56 = vrot.slane %v1695_v52, %v3005_v41  ;;  %v2017_v49 = vld [vmem:[%s3260_s10] sm:$0xff]  ;;  %v2018_v51 = vld [vmem:[%s3260_s10 + $0x8] sm:$0xff]  ;;  %v2019_v52 = vld [vmem:[%s3260_s10 + $0x10] sm:$0xff] }
 0x5e6   : > { %v2415_v48 = vpack.c.bf16 %v1935_v47, %v1934_v46 }
 0x5e7   : > { %v1710_v57 = vcombine.low %v1686_v53, %v1702_v55  ;;  %v1711_v58 = vcombine.high %v1686_v53, %v1702_v55  ;;  %v1726_v59 = vcombine.low %v1693_v54, %v1709_v56  ;;  %v1727_v60 = vcombine.high %v1693_v54, %v1709_v56  ;;  %v2020_v54 = vld [vmem:[%s3260_s10 + $0x18] sm:$0xff]  ;;  %v2021_v56 = vld [vmem:[%s3260_s10 + $0x20] sm:$0xff] }
 0x5e8   : > { %v2418_v53 = vpack.c.bf16 %v2018_v51, %v2017_v49  ;;  %v2421_v55 = vpack.c.bf16 %v2020_v54, %v2019_v52 }
 0x5e9   : > { %v1718_v63 = vrot.slane %v1710_v57, %v3015_v50  ;;  %v1725_v1 = vrot.slane %v1711_v58, %v3015_v50  ;;  %v1734_v2 = vrot.slane %v1726_v59, %v3015_v50  ;;  %v1741_v3 = vrot.slane %v1727_v60, %v3015_v50  ;;  %v2022_v57 = vld [vmem:[%s3260_s10 + $0x28] sm:$0xff] }
 0x5ea   : > { %v2424_v58 = vpack.c.bf16 %v2022_v57, %v2021_v56 }
 0x5eb   : > { %v1746_v5 = vcombine.low %v1718_v63, %v1725_v1  ;;  %v2255_v6 = vcombine.high %v1718_v63, %v1725_v1  ;;  %v1762_v7 = vcombine.low %v1734_v2, %v1741_v3  ;;  %v2256_v8 = vcombine.high %v1734_v2, %v1741_v3  ;;  %v2023_v3 = vld [vmem:[%s3260_s10 + $0x30] sm:$0xff] }
 0x5ed   : > { %v1753_v9 = vrot.slane %v1746_v5, %v3005_v41  ;;  %v1761_v11 = vrot.slane %v2255_v6, %v3005_v41  ;;  %v1769_v12 = vrot.slane %v1762_v7, %v3005_v41  ;;  %v1777_v14 = vrot.slane %v2256_v8, %v3005_v41  ;;  %v2259_v5 = vld [vmem:[#allocation7] ss:$0 sm:$0xff]  ;;  %v2261_v8 = vld [vmem:[%s3261_s11] ss:$0 sm:$0xff] }
 0x5ef   : > { %v1779_v15 = vcombine.high %v1753_v9, %v1761_v11  ;;  %v1795_v16 = vcombine.high %v1769_v12, %v1777_v14  ;;  %v1778_v17 = vcombine.low %v1753_v9, %v1761_v11  ;;  %v1794_v18 = vcombine.low %v1769_v12, %v1777_v14 }
 0x5f1   : > { %v1793_v20 = vrot.slane %v1779_v15, %v3015_v50  ;;  %v1809_v22 = vrot.slane %v1795_v16, %v3015_v50  ;;  %v1786_v23 = vrot.slane %v1778_v17, %v3015_v50  ;;  %v1802_v24 = vrot.slane %v1794_v18, %v3015_v50 }
 0x5f3   : > { %v1812_v25 = vcombine.low %v1793_v20, %v1809_v22  ;;  %v1811_v26 = vcombine.high %v1786_v23, %v1802_v24  ;;  %v1813_v27 = vcombine.high %v1793_v20, %v1809_v22  ;;  %v1810_v31 = vcombine.low %v1786_v23, %v1802_v24 }
 0x5f5   : > { %1819 = vrot.lane.b32.xlu0 %v1812_v25, %s2700_s19  ;;  %1815 = vrot.lane.b32.xlu1 %v1811_v26, %s2701_s14  ;;  %s3286_s14 = sld [smem:[#allocation15_spill]] }
 0x5f9   : > { %1823 = vrot.lane.b32.xlu1 %v1813_v27, %s2702_s27 }
 0x5fb   : > { %s3205_s27 = scalar_lea.hbm %s3286_s14, %s2264_s26 }
 0x667   : > { %v1816_v41 = vpop.permute.xlu1 %1815  ;;  %v1820_v32 = vpop.permute.xlu0 %1819 }
 0x668   : > { %v1826_v33 = vsel %vm1027_vm2, %v1810_v31, %v1816_v41 }
 0x669   : > { %v1828_v35 = vsel %vm1827_vm3, %v1826_v33, %v1820_v32 }
 0x66b   : > { %v1824_v34 = vpop.permute.xlu1 %1823 }
 0x66c   : > { %v1830_v29 = vsel %vm1829_vm4, %v1828_v35, %v1824_v34 }
 0x66d   : > { %2367 = vmatmul.mubr.msk.f32.vlgmr.msra.gmra.mrb[6].mxu0 %vm472_vm0, %v1830_v29 }
 0x66e   : > { %2396 = vmatprep.mubr.msk.f32.mxu0 %vm2691_vm1, %v2692_v13  ;;  %v1932_v13 = vld [vmem:[%s3258_s8] sm:$0xff]  ;;  %2419 = vmatpush3.bf16.msra.mxu0 %v2418_v53 }
 0x66f   : > { %2420 = vmatprep.subr.bf16.mxu0 %v2690_v10 }
 0x672   : > { %2422 = vmatpush3.bf16.msra.mxu0 %v2421_v55 }
 0x673   : > { %2423 = vmatprep.subr.bf16.mxu0 %v2690_v10 }
 0x676   : > { %2425 = vmatpush3.bf16.msra.mxu0 %v2424_v58 }
 0x677   : > { %2426 = vmatprep.subr.bf16.mxu0 %v2690_v10 }
 0x740   : > { %v1904_v50 = vpop.f32.mrb[6].mxu0 }
 0x741   : > { %v1908_v36 = vadd.f32 %v1904_v50, %v2949_v0  ;;  %v2368_v37 = vpop.f32.mrb[7].mxu0  ;;  %v1933_v0 = vld [vmem:[%s3258_s8 + $0x8] sm:$0xff] }
 0x742   : > { %v2412_v45 = vpack.c.bf16 %v1933_v0, %v1932_v13 }
 0x743   : > { %v1916_v28 = vadd.f32 %v2258_v30, %v1908_v36 }
 0x744   : > { %2413 = vmatpush3.bf16.msra.mxu1 %v2412_v45 }
 0x745   : > { %v1917_v38 = vsel %vm472_vm0, %v1916_v28, 0.0  ;;  %2414 = vmatprep.subr.bf16.mxu1 %v2690_v10  ;;  %v2024_v10 = vld [vmem:[%s3260_s10 + $0x38] sm:$0xff] }
 0x746   : > { %1918 = vadd.xlane.f32.xlu1 %v1917_v38  ;;  %v2427_v4 = vpack.c.bf16 %v2024_v10, %v2023_v3 }
 0x748   : > { %2416 = vmatpush3.bf16.msra.mxu1 %v2415_v48  ;;  %2428 = vmatpush3.bf16.msra.mxu0 %v2427_v4 }
 0x7d3   : > { %v1919_v39 = vpop.xlane.xlu1 %1918 }
 0x7d4   : > { %v1920_v40 = vmul.f32 0.03125, %v1919_v39 }
 0x7d6   : > { %v1921_v42 = vsub.f32 %v1916_v28, %v1920_v40 }
 0x7d8   : > { %v1922_v43 = vmul.f32 %v1921_v42, %v1921_v42 }
 0x7da   : > { %v1923_v44 = vsel %vm472_vm0, %v1922_v43, 0.0 }
 0x7db   : > { %1924 = vadd.xlane.f32.xlu0 %v1923_v44 }
 0x868   : > { %v1925_v59 = vpop.xlane.xlu0 %1924 }
 0x869   : > { %v1926_v60 = vmul.f32 0.03125, %v1925_v59 }
 0x86b   : > { %v1927_v61 = vadd.f32 1e-06, %v1926_v60 }
 0x86d   : > { %2527 = vrsqrt.f32 %v1927_v61 }
 0x877   : > { %v2528_v62 = vpop.eup %2527 }
 0x878   : > { %v1929_v63 = vmul.f32 %v2528_v62, %v1921_v42 }
 0x87a   : > { %v1930_v1 = vmul.f32 %v2978_v19, %v1929_v63 }
 0x87c   : > { %v1931_v2 = vadd.f32 %v2983_v21, %v1930_v1 }
 0x87e   : > { %2378 = vmatmul.mubr.msk.f32.vlgmr.msra.gmra.mrb[12].mxu1 %vm472_vm0, %v1931_v2 }
 0x951   : > { %v2012_v6 = vpop.f32.mrb[12].mxu1 }
 0x952   : > { %v2013_v7 = vadd.f32 %v2259_v5, %v2012_v6  ;;  %v2379_v19 = vpop.f32.mrb[13].mxu1 }
 0x954   : > { %v2016_v21 = vmax.f32 %v2013_v7, 0.0 }
 0x956   : > { %2397 = vmatmul.mubr.msk.f32.vlgmr.msra.gmra.mrb[8].mxu0 %vm2032_vm5, %v2016_v21 }
 0xa29   : > { %v2102_v9 = vpop.f32.mrb[8].mxu0 }
 0xa2a   : > { %v2103_v11 = vadd.f32 %v2261_v8, %v2102_v9  ;;  %v2398_v12 = vpop.f32.mrb[9].mxu0 }
 0xa2c   : > { %v2106_v14 = vadd.f32 %v2103_v11, %v1916_v28 }
 0xa2e   : > { %2107 = vst.msk [vmem:[%s464_s28] sm:$0xff] %vm472_vm0, %v2106_v14 }
 0xa2f   : > { %2628 = shalt.err (!%p2625_p10)
}
 0xa30   : > { %s2629_s7 = scalar_lea.hbm %s3205_s27, 128  ;;  %s2633_s28 = scalar_lea.hbm %s3286_s14, 256 }
 0xa31   : > { %p2630_p13 = scmp.ne.s32.totalorder %s3205_s27, %s2629_s7  ;;  %p2634_p11 = scmp.lt.u32.totalorder %s3205_s27, %s3286_s14 }
 0xa32   : > { %p2635_p9 = scmp.lt.u32.totalorder %s2633_s28, %s2629_s7  ;;  %p2637_p1 = scmp.lt.u32.totalorder %s2629_s7, %s3205_s27 }
 0xa33   : > { %p2631_p5 = pnand %p2630_p13, %p2889_p6 }
 0xa34   : > { %p2636_p2 = por %p2635_p9, %p2634_p11 }
 0xa35   : > { %p2632_p0 = pneg %p2631_p5 }
 0xa36   : > { %p2638_p4 = por %p2637_p1, %p2636_p2 }
 0xa38   : > { %p2639_p8 = pnand %p2638_p4, %p2632_p0 }
 0xa3a   : > { %2642 = shalt.err (!%p2639_p8)
}
 0xa3b   : > { %2439 = dma.vmem_to_hbm [thread:$0]  (%p2889_p6), %s3207_s18, 128, %s3205_s27, %s2109_s29  }
 0xa3c PF: > { %s3287_s25 = sld [smem:[#allocation12_spill]]  ;;  %s3288_s13 = sld [smem:[#allocation13_spill]] }
 0xa3d   : > { %p3290_p3 = scmp.ge.s32.totalorder %s2685_s24, 2 }
 0xa42   : > { %s2134_s15 = sand.u32 1, %s3287_s25   ;;  %p3289_p12 = scmp.ne.s32.totalorder %s3288_s13, 0 }
 0xa43   : > { %s2135_s21 = scalar_lea.sflag [#allocation4], %s2134_s15 }
 0xa44   : > { %p2453_p7 = pnand %p3290_p3, %p3289_p12 }
 0xa46   : > { %2668 = dma.done.wait (!%p2453_p7), %s2135_s21, 128  }
 0xa47   : > { %2670 = vsyncadd (!%p2453_p7), %s2135_s21, 4294967168  ;;  %p26_p10 = scmp.ge.s32.totalorder %s2825_s17, 4   ;;  %s3291_s21 = smov %s2677_s22 }
 0xa48   : > { %s3292_s22 = smov %s2681_s23  ;;  %s3293_s23 = smov %s2885_s16 }
 0xa49   : > { %s3294_s24 = smov %s2825_s17  ;;  %28 = sbr.rel (!%p26_p10) target bundleno = 9 (0x9), region = 124 }
 0xa50   :  { %2140 = vsyncpa [#allocation3], 1 }
 0xa51   :  { %2142 = vsyncpa [#allocation3 + $0x1], 1 }
 0xa52   :  { %2143 = vsyncpa [#allocation6], 1 }
 0xa53   :  { %2144 = vsyncpa [#allocation4], 1 }
 0xa54   :  { %2146 = vsyncpa [#allocation4 + $0x1], 1 }

</bundles_post_ra>
